<compile_context>
chip_gen: v7x
topology: tpu7x:2x2x1
jax: 0.10.0
libtpu: 0.0.40
codegen_flags: <defaults>
</compile_context>

<pallas_src>
import functools

import jax
import jax.numpy as jnp
from jax.experimental import pallas as pl
from jax.experimental.pallas import tpu as pltpu

# ----------------------- small model config (consistent with __init__) ------------------
VOCAB = 128
DMODEL = 64
NUM_HEADS = 4
HEAD_DIM = DMODEL // NUM_HEADS      # 16
N_LAYERS = 2
MULTIPLE_OF = 32
NORM_EPS = 1e-5
CTX = 16                            # ctx_size

_HID = int(2 * (4 * DMODEL) / 3)
HIDDEN = MULTIPLE_OF * ((_HID + MULTIPLE_OF - 1) // MULTIPLE_OF)   # 192


# ----------------------------------- fused Pallas kernel --------------------------------

def _llama_kernel(ids_ref, cos_ref, sin_ref, embed_ref, ln1_ref, wqkv_ref, wqkp_ref,
                  wo_ref, ln2_ref, w13_ref, w2_ref, fnorm_ref, o_ref, *,
                  n_layers, num_heads, head_dim, hidden, eps):
    S, D = o_ref.shape
    f32 = jnp.float32

    def rmsnorm(x, w):
        var = jnp.mean(x * x, axis=-1, keepdims=True)
        return x * jax.lax.rsqrt(var + eps) * w

    # ---- embedding: one-hot (S, VOCAB) @ table (VOCAB, D) ----
    vocab = embed_ref.shape[0]
    iota_v = jax.lax.broadcasted_iota(jnp.int32, (S, vocab), 1)
    onehot = (iota_v == ids_ref[...]).astype(f32)
    h = jnp.dot(onehot, embed_ref[...], preferred_element_type=f32)          # (S, D)

    cos = cos_ref[...]                                                       # (S, D)
    sin = sin_ref[...]                                                       # (S, D), sign baked in
    row = jax.lax.broadcasted_iota(jnp.int32, (S, S), 0)
    col = jax.lax.broadcasted_iota(jnp.int32, (S, S), 1)
    causal_bias = jnp.where(col <= row, 0.0, -1e30).astype(f32)
    scale = 1.0 / (head_dim ** 0.5)
    contract_last = (((1,), (1,)), ((), ()))                                 # q @ k^T

    for l in range(n_layers):
        # -------------------- attention sub-block --------------------
        xn = rmsnorm(h, ln1_ref[l])
        qkv = jnp.dot(xn, wqkv_ref[l], preferred_element_type=f32)           # (S, 3D)
        qk_sw = jnp.dot(xn, wqkp_ref[l], preferred_element_type=f32)         # (S, 2D) pair-swapped
        q = qkv[:, :D] * cos + qk_sw[:, :D] * sin                            # in-kernel RoPE
        k = qkv[:, D:2 * D] * cos + qk_sw[:, D:2 * D] * sin
        v = qkv[:, 2 * D:]
        wo_l = wo_ref[l]                                                     # (D, D)

        delta = jnp.zeros((S, D), f32)
        for hh in range(num_heads):
            sl = slice(hh * head_dim, (hh + 1) * head_dim)
            qh = q[:, sl]
            kh = k[:, sl]
            vh = v[:, sl]
            sc = jax.lax.dot_general(qh, kh, contract_last,
                                     preferred_element_type=f32) * scale + causal_bias
            m = jnp.max(sc, axis=-1, keepdims=True)
            e = jnp.exp(sc - m)
            p = e * pl.reciprocal(jnp.sum(e, axis=-1, keepdims=True), approx=True)
            oh = jnp.dot(p, vh, preferred_element_type=f32)                  # (S, hd)
            # fold output projection per-head: attn @ Wo == sum_h attn_h @ Wo[h-rows]
            delta = delta + jnp.dot(oh, wo_l[sl, :], preferred_element_type=f32)
        h = h + delta                                                        # fused residual add

        # -------------------- SwiGLU FFN sub-block --------------------
        xn2 = rmsnorm(h, ln2_ref[l])
        h13 = jnp.dot(xn2, w13_ref[l], preferred_element_type=f32)           # (S, 2*hidden)
        h1 = h13[:, :hidden]
        h3 = h13[:, hidden:]
        g = h1 * jax.nn.sigmoid(h1) * h3                                     # SiLU(x W1) * (x W3)
        h = h + jnp.dot(g, w2_ref[l], preferred_element_type=f32)            # fused residual add

    o_ref[...] = rmsnorm(h, fnorm_ref[...])


# --------------------------------- host / JAX glue --------------------------------------

def precompute_freqs_cis(dim, end, theta=10000.0):
    freqs = 1.0 / (theta ** (jnp.arange(0, dim, 2)[: dim // 2].astype(jnp.float32) / dim))
    t = jnp.arange(end, dtype=jnp.float32)
    freqs = jnp.outer(t, freqs)                  # (end, dim//2)
    return jnp.cos(freqs), jnp.sin(freqs)


def init_params(key):
    keys = jax.random.split(key, 1 + N_LAYERS)
    scale = 0.02
    params = {
        "embed": scale * jax.random.normal(keys[0], (VOCAB, DMODEL), jnp.float32),
        "final_norm": jnp.ones((DMODEL,), jnp.float32),
        "layers": [],
    }
    for i in range(N_LAYERS):
        ks = jax.random.split(keys[1 + i], 7)
        params["layers"].append(dict(
            ln1=jnp.ones((DMODEL,), jnp.float32),
            ln2=jnp.ones((DMODEL,), jnp.float32),
            # stored as (in, out) == transpose of torch nn.Linear.weight
            wq=scale * jax.random.normal(ks[0], (DMODEL, DMODEL), jnp.float32),
            wk=scale * jax.random.normal(ks[1], (DMODEL, DMODEL), jnp.float32),
            wv=scale * jax.random.normal(ks[2], (DMODEL, DMODEL), jnp.float32),
            wo=scale * jax.random.normal(ks[3], (DMODEL, DMODEL), jnp.float32),
            w1=scale * jax.random.normal(ks[4], (DMODEL, HIDDEN), jnp.float32),
            w3=scale * jax.random.normal(ks[5], (DMODEL, HIDDEN), jnp.float32),
            w2=scale * jax.random.normal(ks[6], (HIDDEN, DMODEL), jnp.float32),
        ))
    return params


def _swap_pairs_cols(w):
    """Swap adjacent output columns (2i <-> 2i+1): folds the RoPE pair-swap into the weight."""
    d_in, d_out = w.shape
    return w.reshape(d_in, d_out // 2, 2)[:, :, ::-1].reshape(d_in, d_out)


def causal_llama_forward(params, ids, freqs_cos, freqs_sin):
    B, S = ids.shape
    D, L, H = DMODEL, N_LAYERS, NUM_HEADS

    # RoPE tables, pre-interleaved to the llama convention with sign baked into sin:
    #   cos_full[s, 2i] = cos_full[s, 2i+1] = cos_i ;  sin_full[s, 2i] = -sin_i, [s, 2i+1] = +sin_i
    cos_h = jnp.repeat(freqs_cos[:S], 2, axis=-1)                             # (S, hd)
    sin_h = jnp.stack([-freqs_sin[:S], freqs_sin[:S]], axis=-1).reshape(S, HEAD_DIM)
    cos_full = jnp.tile(cos_h, (1, H))                                        # (S, D)
    sin_full = jnp.tile(sin_h, (1, H))                                        # (S, D)

    # Pack weights: concatenated QKV / W1W3, pair-swapped QK for in-kernel RoPE, stacked over layers.
    wqkv = jnp.stack([jnp.concatenate([p["wq"], p["wk"], p["wv"]], axis=1)
                      for p in params["layers"]])                             # (L, D, 3D)
    wqkp = jnp.stack([jnp.concatenate([_swap_pairs_cols(p["wq"]),
                                       _swap_pairs_cols(p["wk"])], axis=1)
                      for p in params["layers"]])                             # (L, D, 2D)
    wo = jnp.stack([p["wo"] for p in params["layers"]])                       # (L, D, D)
    w13 = jnp.stack([jnp.concatenate([p["w1"], p["w3"]], axis=1)
                     for p in params["layers"]])                              # (L, D, 2*HIDDEN)
    w2 = jnp.stack([p["w2"] for p in params["layers"]])                       # (L, HIDDEN, D)
    ln1 = jnp.stack([p["ln1"].reshape(1, D) for p in params["layers"]])       # (L, 1, D)
    ln2 = jnp.stack([p["ln2"].reshape(1, D) for p in params["layers"]])       # (L, 1, D)
    fnorm = params["final_norm"].reshape(1, D)
    ids2d = ids.reshape(B * S, 1).astype(jnp.int32)

    def full3(shape):
        return pl.BlockSpec(shape, lambda b: (0, 0, 0))

    out = pl.pallas_call(
        functools.partial(_llama_kernel, n_layers=L, num_heads=H,
                          head_dim=HEAD_DIM, hidden=HIDDEN, eps=NORM_EPS),
        grid=(B,),
        in_specs=[
            pl.BlockSpec((S, 1), lambda b: (b, 0)),                 # ids (per batch)
            pl.BlockSpec((S, D), lambda b: (0, 0)),                 # cos
            pl.BlockSpec((S, D), lambda b: (0, 0)),                 # sin
            pl.BlockSpec((VOCAB, D), lambda b: (0, 0)),             # embed table
            full3((L, 1, D)),                                       # ln1
            full3((L, D, 3 * D)),                                   # wqkv
            full3((L, D, 2 * D)),                                   # wqkp (pair-swapped q/k)
            full3((L, D, D)),                                       # wo
            full3((L, 1, D)),                                       # ln2
            full3((L, D, 2 * HIDDEN)),                              # w13
            full3((L, HIDDEN, D)),                                  # w2
            pl.BlockSpec((1, D), lambda b: (0, 0)),                 # final norm
        ],
        out_specs=pl.BlockSpec((S, D), lambda b: (b, 0)),
        out_shape=jax.ShapeDtypeStruct((B * S, D), jnp.float32),
        compiler_params=pltpu.CompilerParams(dimension_semantics=("parallel",)),
    )(ids2d, cos_full, sin_full, params["embed"], ln1, wqkv, wqkp, wo, ln2, w13, w2, fnorm)

    return out.reshape(B, S, D)


if __name__ == "__main__":
    key = jax.random.PRNGKey(0)
    pkey, dkey = jax.random.split(key)
    params = init_params(pkey)

    B, S = 2, 8
    ids = jax.random.randint(dkey, (B, S), 0, VOCAB, dtype=jnp.int32)
    freqs_cos, freqs_sin = precompute_freqs_cis(HEAD_DIM, CTX)

    fwd = jax.jit(causal_llama_forward)
    out = fwd(params, ids, freqs_cos, freqs_sin)
    jax.block_until_ready(out)
    assert out.shape == (B, S, DMODEL) and out.dtype == jnp.float32
    assert bool(jnp.all(jnp.isfinite(out)))
    print("KERNEL_OK")
</pallas_src>

<mosaic_0001>
module attributes {stable_mosaic.version = 11 : i64} {
  func.func @_llama_kernel(%arg0: i32, %arg1: memref<8x1xi32, #tpu.memory_space<vmem>>, %arg2: memref<8x64xf32, #tpu.memory_space<vmem>>, %arg3: memref<8x64xf32, #tpu.memory_space<vmem>>, %arg4: memref<128x64xf32, #tpu.memory_space<vmem>>, %arg5: memref<2x1x64xf32, #tpu.memory_space<vmem>>, %arg6: memref<2x64x192xf32, #tpu.memory_space<vmem>>, %arg7: memref<2x64x128xf32, #tpu.memory_space<vmem>>, %arg8: memref<2x64x64xf32, #tpu.memory_space<vmem>>, %arg9: memref<2x1x64xf32, #tpu.memory_space<vmem>>, %arg10: memref<2x64x384xf32, #tpu.memory_space<vmem>>, %arg11: memref<2x192x64xf32, #tpu.memory_space<vmem>>, %arg12: memref<1x64xf32, #tpu.memory_space<vmem>>, %arg13: memref<8x64xf32, #tpu.memory_space<vmem>>) attributes {dimension_semantics = [#tpu.dimension_semantics<parallel>], iteration_bounds = array<i64: 2>, scalar_prefetch = 0 : i64, scratch_operands = 0 : i64, tpu.core_type = #tpu.core_type<tc>, window_params = [{transform_indices = @transform_0, window_bounds = array<i64: 8, 1>}, {pipeline_mode = #tpu.pipeline_mode<synchronous>, transform_indices = @transform_1, window_bounds = array<i64: 8, 64>}, {pipeline_mode = #tpu.pipeline_mode<synchronous>, transform_indices = @transform_2, window_bounds = array<i64: 8, 64>}, {pipeline_mode = #tpu.pipeline_mode<synchronous>, transform_indices = @transform_3, window_bounds = array<i64: 128, 64>}, {pipeline_mode = #tpu.pipeline_mode<synchronous>, transform_indices = @transform_4, window_bounds = array<i64: 2, 1, 64>}, {pipeline_mode = #tpu.pipeline_mode<synchronous>, transform_indices = @transform_5, window_bounds = array<i64: 2, 64, 192>}, {pipeline_mode = #tpu.pipeline_mode<synchronous>, transform_indices = @transform_6, window_bounds = array<i64: 2, 64, 128>}, {pipeline_mode = #tpu.pipeline_mode<synchronous>, transform_indices = @transform_7, window_bounds = array<i64: 2, 64, 64>}, {pipeline_mode = #tpu.pipeline_mode<synchronous>, transform_indices = @transform_8, window_bounds = array<i64: 2, 1, 64>}, {pipeline_mode = #tpu.pipeline_mode<synchronous>, transform_indices = @transform_9, window_bounds = array<i64: 2, 64, 384>}, {pipeline_mode = #tpu.pipeline_mode<synchronous>, transform_indices = @transform_10, window_bounds = array<i64: 2, 192, 64>}, {pipeline_mode = #tpu.pipeline_mode<synchronous>, transform_indices = @transform_11, window_bounds = array<i64: 1, 64>}, {transform_indices = @transform_12, window_bounds = array<i64: 8, 64>}]} {
    %0 = tpu.iota {dimensions = array<i32: 1>} : vector<8x128xi32>
    %c0 = arith.constant 0 : index
    %c0_0 = arith.constant 0 : index
    %1 = vector.load %arg1[%c0, %c0_0] : memref<8x1xi32, #tpu.memory_space<vmem>>, vector<8x1xi32>
    %2 = vector.broadcast %1 : vector<8x1xi32> to vector<8x128xi32>
    %3 = arith.cmpi eq, %0, %2 : vector<8x128xi32>
    %4 = arith.extui %3 : vector<8x128xi1> to vector<8x128xi32>
    %5 = arith.sitofp %4 : vector<8x128xi32> to vector<8x128xf32>
    %c0_1 = arith.constant 0 : index
    %c0_2 = arith.constant 0 : index
    %6 = vector.load %arg4[%c0_1, %c0_2] : memref<128x64xf32, #tpu.memory_space<vmem>>, vector<128x64xf32>
    %cst = arith.constant dense<0.000000e+00> : vector<8x64xf32>
    %7 = tpu.matmul %5, %6, %cst {dimension_numbers = #tpu.dot_dimension_numbers<[1], [0], [0], [1], [0, 0, 1, 1], [], []>} : vector<8x128xf32>, vector<128x64xf32>, vector<8x64xf32> -> vector<8x64xf32>
    %c0_3 = arith.constant 0 : index
    %c0_4 = arith.constant 0 : index
    %8 = vector.load %arg2[%c0_3, %c0_4] : memref<8x64xf32, #tpu.memory_space<vmem>>, vector<8x64xf32>
    %c0_5 = arith.constant 0 : index
    %c0_6 = arith.constant 0 : index
    %9 = vector.load %arg3[%c0_5, %c0_6] : memref<8x64xf32, #tpu.memory_space<vmem>>, vector<8x64xf32>
    %10 = tpu.iota {dimensions = array<i32: 0>} : vector<8x8xi32>
    %11 = tpu.iota {dimensions = array<i32: 1>} : vector<8x8xi32>
    %12 = arith.cmpi sle, %11, %10 : vector<8x8xi32>
    %cst_7 = arith.constant 0.000000e+00 : f32
    %cst_8 = arith.constant -1.000000e+30 : f32
    %13 = vector.broadcast %cst_7 : f32 to vector<8x8xf32>
    %14 = vector.broadcast %cst_8 : f32 to vector<8x8xf32>
    %15 = arith.select %12, %13, %14 : vector<8x8xi1>, vector<8x8xf32>
    %c0_9 = arith.constant 0 : index
    %c0_10 = arith.constant 0 : index
    %c0_11 = arith.constant 0 : index
    %16 = vector.load %arg5[%c0_9, %c0_10, %c0_11] : memref<2x1x64xf32, #tpu.memory_space<vmem>>, vector<1x1x64xf32>
    %17 = vector.shape_cast %16 : vector<1x1x64xf32> to vector<1x64xf32>
    %18 = arith.mulf %7, %7 : vector<8x64xf32>
    %cst_12 = arith.constant dense<0.000000e+00> : vector<8xf32>
    %19 = vector.multi_reduction <add>, %18, %cst_12 [1] : vector<8x64xf32> to vector<8xf32>
    %20 = vector.shape_cast %19 : vector<8xf32> to vector<8x1xf32>
    %cst_13 = arith.constant 6.400000e+01 : f32
    %21 = vector.broadcast %cst_13 : f32 to vector<8x1xf32>
    %22 = arith.divf %20, %21 : vector<8x1xf32>
    %cst_14 = arith.constant 9.99999974E-6 : f32
    %23 = vector.broadcast %cst_14 : f32 to vector<8x1xf32>
    %24 = arith.addf %22, %23 : vector<8x1xf32>
    %25 = math.rsqrt %24 : vector<8x1xf32>
    %26 = vector.broadcast %25 : vector<8x1xf32> to vector<8x64xf32>
    %27 = arith.mulf %7, %26 : vector<8x64xf32>
    %28 = vector.broadcast %17 : vector<1x64xf32> to vector<8x64xf32>
    %29 = arith.mulf %27, %28 : vector<8x64xf32>
    %c0_15 = arith.constant 0 : index
    %c0_16 = arith.constant 0 : index
    %c0_17 = arith.constant 0 : index
    %30 = vector.load %arg6[%c0_15, %c0_16, %c0_17] : memref<2x64x192xf32, #tpu.memory_space<vmem>>, vector<1x64x192xf32>
    %31 = vector.shape_cast %30 : vector<1x64x192xf32> to vector<64x192xf32>
    %cst_18 = arith.constant dense<0.000000e+00> : vector<8x192xf32>
    %32 = tpu.matmul %29, %31, %cst_18 {dimension_numbers = #tpu.dot_dimension_numbers<[1], [0], [0], [1], [0, 0, 1, 1], [], []>} : vector<8x64xf32>, vector<64x192xf32>, vector<8x192xf32> -> vector<8x192xf32>
    %c0_19 = arith.constant 0 : index
    %c0_20 = arith.constant 0 : index
    %c0_21 = arith.constant 0 : index
    %33 = vector.load %arg7[%c0_19, %c0_20, %c0_21] : memref<2x64x128xf32, #tpu.memory_space<vmem>>, vector<1x64x128xf32>
    %34 = vector.shape_cast %33 : vector<1x64x128xf32> to vector<64x128xf32>
    %cst_22 = arith.constant dense<0.000000e+00> : vector<8x128xf32>
    %35 = tpu.matmul %29, %34, %cst_22 {dimension_numbers = #tpu.dot_dimension_numbers<[1], [0], [0], [1], [0, 0, 1, 1], [], []>} : vector<8x64xf32>, vector<64x128xf32>, vector<8x128xf32> -> vector<8x128xf32>
    %36 = vector.extract_strided_slice %32 {offsets = [0, 0], sizes = [8, 64], strides = [1, 1]} : vector<8x192xf32> to vector<8x64xf32>
    %37 = arith.mulf %36, %8 : vector<8x64xf32>
    %38 = vector.extract_strided_slice %35 {offsets = [0, 0], sizes = [8, 64], strides = [1, 1]} : vector<8x128xf32> to vector<8x64xf32>
    %39 = arith.mulf %38, %9 : vector<8x64xf32>
    %40 = arith.addf %37, %39 : vector<8x64xf32>
    %41 = vector.extract_strided_slice %32 {offsets = [0, 64], sizes = [8, 64], strides = [1, 1]} : vector<8x192xf32> to vector<8x64xf32>
    %42 = arith.mulf %41, %8 : vector<8x64xf32>
    %43 = vector.extract_strided_slice %35 {offsets = [0, 64], sizes = [8, 64], strides = [1, 1]} : vector<8x128xf32> to vector<8x64xf32>
    %44 = arith.mulf %43, %9 : vector<8x64xf32>
    %45 = arith.addf %42, %44 : vector<8x64xf32>
    %46 = vector.extract_strided_slice %32 {offsets = [0, 128], sizes = [8, 64], strides = [1, 1]} : vector<8x192xf32> to vector<8x64xf32>
    %c0_23 = arith.constant 0 : index
    %c0_24 = arith.constant 0 : index
    %c0_25 = arith.constant 0 : index
    %47 = vector.load %arg8[%c0_23, %c0_24, %c0_25] : memref<2x64x64xf32, #tpu.memory_space<vmem>>, vector<1x64x64xf32>
    %48 = vector.shape_cast %47 : vector<1x64x64xf32> to vector<64x64xf32>
    %cst_26 = arith.constant 0.000000e+00 : f32
    %49 = vector.broadcast %cst_26 : f32 to vector<8x64xf32>
    %50 = vector.extract_strided_slice %40 {offsets = [0, 0], sizes = [8, 16], strides = [1, 1]} : vector<8x64xf32> to vector<8x16xf32>
    %51 = vector.extract_strided_slice %45 {offsets = [0, 0], sizes = [8, 16], strides = [1, 1]} : vector<8x64xf32> to vector<8x16xf32>
    %52 = vector.extract_strided_slice %46 {offsets = [0, 0], sizes = [8, 16], strides = [1, 1]} : vector<8x64xf32> to vector<8x16xf32>
    %cst_27 = arith.constant dense<0.000000e+00> : vector<8x8xf32>
    %53 = tpu.matmul %50, %51, %cst_27 {dimension_numbers = #tpu.dot_dimension_numbers<[1], [1], [0], [0], [0, 0, 1, 0], [], []>} : vector<8x16xf32>, vector<8x16xf32>, vector<8x8xf32> -> vector<8x8xf32>
    %cst_28 = arith.constant 2.500000e-01 : f32
    %54 = vector.broadcast %cst_28 : f32 to vector<8x8xf32>
    %55 = arith.mulf %53, %54 : vector<8x8xf32>
    %56 = arith.addf %55, %15 : vector<8x8xf32>
    %cst_29 = arith.constant dense<0xFF800000> : vector<8xf32>
    %57 = vector.multi_reduction <maximumf>, %56, %cst_29 [1] : vector<8x8xf32> to vector<8xf32>
    %58 = vector.shape_cast %57 : vector<8xf32> to vector<8x1xf32>
    %59 = vector.broadcast %58 : vector<8x1xf32> to vector<8x8xf32>
    %60 = arith.subf %56, %59 : vector<8x8xf32>
    %61 = math.exp %60 : vector<8x8xf32>
    %cst_30 = arith.constant dense<0.000000e+00> : vector<8xf32>
    %62 = vector.multi_reduction <add>, %61, %cst_30 [1] : vector<8x8xf32> to vector<8xf32>
    %63 = vector.shape_cast %62 : vector<8xf32> to vector<8x1xf32>
    %64 = tpu.reciprocal %63 {approx = true} : vector<8x1xf32> -> vector<8x1xf32>
    %65 = vector.broadcast %64 : vector<8x1xf32> to vector<8x8xf32>
    %66 = arith.mulf %61, %65 : vector<8x8xf32>
    %cst_31 = arith.constant dense<0.000000e+00> : vector<8x16xf32>
    %67 = tpu.matmul %66, %52, %cst_31 {dimension_numbers = #tpu.dot_dimension_numbers<[1], [0], [0], [1], [0, 0, 1, 1], [], []>} : vector<8x8xf32>, vector<8x16xf32>, vector<8x16xf32> -> vector<8x16xf32>
    %68 = vector.extract_strided_slice %48 {offsets = [0, 0], sizes = [16, 64], strides = [1, 1]} : vector<64x64xf32> to vector<16x64xf32>
    %cst_32 = arith.constant dense<0.000000e+00> : vector<8x64xf32>
    %69 = tpu.matmul %67, %68, %cst_32 {dimension_numbers = #tpu.dot_dimension_numbers<[1], [0], [0], [1], [0, 0, 1, 1], [], []>} : vector<8x16xf32>, vector<16x64xf32>, vector<8x64xf32> -> vector<8x64xf32>
    %70 = arith.addf %49, %69 : vector<8x64xf32>
    %71 = vector.extract_strided_slice %40 {offsets = [0, 16], sizes = [8, 16], strides = [1, 1]} : vector<8x64xf32> to vector<8x16xf32>
    %72 = vector.extract_strided_slice %45 {offsets = [0, 16], sizes = [8, 16], strides = [1, 1]} : vector<8x64xf32> to vector<8x16xf32>
    %73 = vector.extract_strided_slice %46 {offsets = [0, 16], sizes = [8, 16], strides = [1, 1]} : vector<8x64xf32> to vector<8x16xf32>
    %cst_33 = arith.constant dense<0.000000e+00> : vector<8x8xf32>
    %74 = tpu.matmul %71, %72, %cst_33 {dimension_numbers = #tpu.dot_dimension_numbers<[1], [1], [0], [0], [0, 0, 1, 0], [], []>} : vector<8x16xf32>, vector<8x16xf32>, vector<8x8xf32> -> vector<8x8xf32>
    %cst_34 = arith.constant 2.500000e-01 : f32
    %75 = vector.broadcast %cst_34 : f32 to vector<8x8xf32>
    %76 = arith.mulf %74, %75 : vector<8x8xf32>
    %77 = arith.addf %76, %15 : vector<8x8xf32>
    %cst_35 = arith.constant dense<0xFF800000> : vector<8xf32>
    %78 = vector.multi_reduction <maximumf>, %77, %cst_35 [1] : vector<8x8xf32> to vector<8xf32>
    %79 = vector.shape_cast %78 : vector<8xf32> to vector<8x1xf32>
    %80 = vector.broadcast %79 : vector<8x1xf32> to vector<8x8xf32>
    %81 = arith.subf %77, %80 : vector<8x8xf32>
    %82 = math.exp %81 : vector<8x8xf32>
    %cst_36 = arith.constant dense<0.000000e+00> : vector<8xf32>
    %83 = vector.multi_reduction <add>, %82, %cst_36 [1] : vector<8x8xf32> to vector<8xf32>
    %84 = vector.shape_cast %83 : vector<8xf32> to vector<8x1xf32>
    %85 = tpu.reciprocal %84 {approx = true} : vector<8x1xf32> -> vector<8x1xf32>
    %86 = vector.broadcast %85 : vector<8x1xf32> to vector<8x8xf32>
    %87 = arith.mulf %82, %86 : vector<8x8xf32>
    %cst_37 = arith.constant dense<0.000000e+00> : vector<8x16xf32>
    %88 = tpu.matmul %87, %73, %cst_37 {dimension_numbers = #tpu.dot_dimension_numbers<[1], [0], [0], [1], [0, 0, 1, 1], [], []>} : vector<8x8xf32>, vector<8x16xf32>, vector<8x16xf32> -> vector<8x16xf32>
    %89 = vector.extract_strided_slice %48 {offsets = [16, 0], sizes = [16, 64], strides = [1, 1]} : vector<64x64xf32> to vector<16x64xf32>
    %cst_38 = arith.constant dense<0.000000e+00> : vector<8x64xf32>
    %90 = tpu.matmul %88, %89, %cst_38 {dimension_numbers = #tpu.dot_dimension_numbers<[1], [0], [0], [1], [0, 0, 1, 1], [], []>} : vector<8x16xf32>, vector<16x64xf32>, vector<8x64xf32> -> vector<8x64xf32>
    %91 = arith.addf %70, %90 : vector<8x64xf32>
    %92 = vector.extract_strided_slice %40 {offsets = [0, 32], sizes = [8, 16], strides = [1, 1]} : vector<8x64xf32> to vector<8x16xf32>
    %93 = vector.extract_strided_slice %45 {offsets = [0, 32], sizes = [8, 16], strides = [1, 1]} : vector<8x64xf32> to vector<8x16xf32>
    %94 = vector.extract_strided_slice %46 {offsets = [0, 32], sizes = [8, 16], strides = [1, 1]} : vector<8x64xf32> to vector<8x16xf32>
    %cst_39 = arith.constant dense<0.000000e+00> : vector<8x8xf32>
    %95 = tpu.matmul %92, %93, %cst_39 {dimension_numbers = #tpu.dot_dimension_numbers<[1], [1], [0], [0], [0, 0, 1, 0], [], []>} : vector<8x16xf32>, vector<8x16xf32>, vector<8x8xf32> -> vector<8x8xf32>
    %cst_40 = arith.constant 2.500000e-01 : f32
    %96 = vector.broadcast %cst_40 : f32 to vector<8x8xf32>
    %97 = arith.mulf %95, %96 : vector<8x8xf32>
    %98 = arith.addf %97, %15 : vector<8x8xf32>
    %cst_41 = arith.constant dense<0xFF800000> : vector<8xf32>
    %99 = vector.multi_reduction <maximumf>, %98, %cst_41 [1] : vector<8x8xf32> to vector<8xf32>
    %100 = vector.shape_cast %99 : vector<8xf32> to vector<8x1xf32>
    %101 = vector.broadcast %100 : vector<8x1xf32> to vector<8x8xf32>
    %102 = arith.subf %98, %101 : vector<8x8xf32>
    %103 = math.exp %102 : vector<8x8xf32>
    %cst_42 = arith.constant dense<0.000000e+00> : vector<8xf32>
    %104 = vector.multi_reduction <add>, %103, %cst_42 [1] : vector<8x8xf32> to vector<8xf32>
    %105 = vector.shape_cast %104 : vector<8xf32> to vector<8x1xf32>
    %106 = tpu.reciprocal %105 {approx = true} : vector<8x1xf32> -> vector<8x1xf32>
    %107 = vector.broadcast %106 : vector<8x1xf32> to vector<8x8xf32>
    %108 = arith.mulf %103, %107 : vector<8x8xf32>
    %cst_43 = arith.constant dense<0.000000e+00> : vector<8x16xf32>
    %109 = tpu.matmul %108, %94, %cst_43 {dimension_numbers = #tpu.dot_dimension_numbers<[1], [0], [0], [1], [0, 0, 1, 1], [], []>} : vector<8x8xf32>, vector<8x16xf32>, vector<8x16xf32> -> vector<8x16xf32>
    %110 = vector.extract_strided_slice %48 {offsets = [32, 0], sizes = [16, 64], strides = [1, 1]} : vector<64x64xf32> to vector<16x64xf32>
    %cst_44 = arith.constant dense<0.000000e+00> : vector<8x64xf32>
    %111 = tpu.matmul %109, %110, %cst_44 {dimension_numbers = #tpu.dot_dimension_numbers<[1], [0], [0], [1], [0, 0, 1, 1], [], []>} : vector<8x16xf32>, vector<16x64xf32>, vector<8x64xf32> -> vector<8x64xf32>
    %112 = arith.addf %91, %111 : vector<8x64xf32>
    %113 = vector.extract_strided_slice %40 {offsets = [0, 48], sizes = [8, 16], strides = [1, 1]} : vector<8x64xf32> to vector<8x16xf32>
    %114 = vector.extract_strided_slice %45 {offsets = [0, 48], sizes = [8, 16], strides = [1, 1]} : vector<8x64xf32> to vector<8x16xf32>
    %115 = vector.extract_strided_slice %46 {offsets = [0, 48], sizes = [8, 16], strides = [1, 1]} : vector<8x64xf32> to vector<8x16xf32>
    %cst_45 = arith.constant dense<0.000000e+00> : vector<8x8xf32>
    %116 = tpu.matmul %113, %114, %cst_45 {dimension_numbers = #tpu.dot_dimension_numbers<[1], [1], [0], [0], [0, 0, 1, 0], [], []>} : vector<8x16xf32>, vector<8x16xf32>, vector<8x8xf32> -> vector<8x8xf32>
    %cst_46 = arith.constant 2.500000e-01 : f32
    %117 = vector.broadcast %cst_46 : f32 to vector<8x8xf32>
    %118 = arith.mulf %116, %117 : vector<8x8xf32>
    %119 = arith.addf %118, %15 : vector<8x8xf32>
    %cst_47 = arith.constant dense<0xFF800000> : vector<8xf32>
    %120 = vector.multi_reduction <maximumf>, %119, %cst_47 [1] : vector<8x8xf32> to vector<8xf32>
    %121 = vector.shape_cast %120 : vector<8xf32> to vector<8x1xf32>
    %122 = vector.broadcast %121 : vector<8x1xf32> to vector<8x8xf32>
    %123 = arith.subf %119, %122 : vector<8x8xf32>
    %124 = math.exp %123 : vector<8x8xf32>
    %cst_48 = arith.constant dense<0.000000e+00> : vector<8xf32>
    %125 = vector.multi_reduction <add>, %124, %cst_48 [1] : vector<8x8xf32> to vector<8xf32>
    %126 = vector.shape_cast %125 : vector<8xf32> to vector<8x1xf32>
    %127 = tpu.reciprocal %126 {approx = true} : vector<8x1xf32> -> vector<8x1xf32>
    %128 = vector.broadcast %127 : vector<8x1xf32> to vector<8x8xf32>
    %129 = arith.mulf %124, %128 : vector<8x8xf32>
    %cst_49 = arith.constant dense<0.000000e+00> : vector<8x16xf32>
    %130 = tpu.matmul %129, %115, %cst_49 {dimension_numbers = #tpu.dot_dimension_numbers<[1], [0], [0], [1], [0, 0, 1, 1], [], []>} : vector<8x8xf32>, vector<8x16xf32>, vector<8x16xf32> -> vector<8x16xf32>
    %131 = vector.extract_strided_slice %48 {offsets = [48, 0], sizes = [16, 64], strides = [1, 1]} : vector<64x64xf32> to vector<16x64xf32>
    %cst_50 = arith.constant dense<0.000000e+00> : vector<8x64xf32>
    %132 = tpu.matmul %130, %131, %cst_50 {dimension_numbers = #tpu.dot_dimension_numbers<[1], [0], [0], [1], [0, 0, 1, 1], [], []>} : vector<8x16xf32>, vector<16x64xf32>, vector<8x64xf32> -> vector<8x64xf32>
    %133 = arith.addf %112, %132 : vector<8x64xf32>
    %134 = arith.addf %7, %133 : vector<8x64xf32>
    %c0_51 = arith.constant 0 : index
    %c0_52 = arith.constant 0 : index
    %c0_53 = arith.constant 0 : index
    %135 = vector.load %arg9[%c0_51, %c0_52, %c0_53] : memref<2x1x64xf32, #tpu.memory_space<vmem>>, vector<1x1x64xf32>
    %136 = vector.shape_cast %135 : vector<1x1x64xf32> to vector<1x64xf32>
    %137 = arith.mulf %134, %134 : vector<8x64xf32>
    %cst_54 = arith.constant dense<0.000000e+00> : vector<8xf32>
    %138 = vector.multi_reduction <add>, %137, %cst_54 [1] : vector<8x64xf32> to vector<8xf32>
    %139 = vector.shape_cast %138 : vector<8xf32> to vector<8x1xf32>
    %cst_55 = arith.constant 6.400000e+01 : f32
    %140 = vector.broadcast %cst_55 : f32 to vector<8x1xf32>
    %141 = arith.divf %139, %140 : vector<8x1xf32>
    %cst_56 = arith.constant 9.99999974E-6 : f32
    %142 = vector.broadcast %cst_56 : f32 to vector<8x1xf32>
    %143 = arith.addf %141, %142 : vector<8x1xf32>
    %144 = math.rsqrt %143 : vector<8x1xf32>
    %145 = vector.broadcast %144 : vector<8x1xf32> to vector<8x64xf32>
    %146 = arith.mulf %134, %145 : vector<8x64xf32>
    %147 = vector.broadcast %136 : vector<1x64xf32> to vector<8x64xf32>
    %148 = arith.mulf %146, %147 : vector<8x64xf32>
    %c0_57 = arith.constant 0 : index
    %c0_58 = arith.constant 0 : index
    %c0_59 = arith.constant 0 : index
    %149 = vector.load %arg10[%c0_57, %c0_58, %c0_59] : memref<2x64x384xf32, #tpu.memory_space<vmem>>, vector<1x64x384xf32>
    %150 = vector.shape_cast %149 : vector<1x64x384xf32> to vector<64x384xf32>
    %cst_60 = arith.constant dense<0.000000e+00> : vector<8x384xf32>
    %151 = tpu.matmul %148, %150, %cst_60 {dimension_numbers = #tpu.dot_dimension_numbers<[1], [0], [0], [1], [0, 0, 1, 1], [], []>} : vector<8x64xf32>, vector<64x384xf32>, vector<8x384xf32> -> vector<8x384xf32>
    %152 = vector.extract_strided_slice %151 {offsets = [0, 0], sizes = [8, 192], strides = [1, 1]} : vector<8x384xf32> to vector<8x192xf32>
    %153 = vector.extract_strided_slice %151 {offsets = [0, 192], sizes = [8, 192], strides = [1, 1]} : vector<8x384xf32> to vector<8x192xf32>
    %154 = arith.negf %152 : vector<8x192xf32>
    %155 = math.exp %154 : vector<8x192xf32>
    %cst_61 = arith.constant 1.000000e+00 : f32
    %156 = vector.broadcast %cst_61 : f32 to vector<8x192xf32>
    %157 = arith.addf %156, %155 : vector<8x192xf32>
    %158 = arith.divf %156, %157 : vector<8x192xf32>
    %159 = arith.mulf %152, %158 : vector<8x192xf32>
    %160 = arith.mulf %159, %153 : vector<8x192xf32>
    %c0_62 = arith.constant 0 : index
    %c0_63 = arith.constant 0 : index
    %c0_64 = arith.constant 0 : index
    %161 = vector.load %arg11[%c0_62, %c0_63, %c0_64] : memref<2x192x64xf32, #tpu.memory_space<vmem>>, vector<1x192x64xf32>
    %162 = vector.shape_cast %161 : vector<1x192x64xf32> to vector<192x64xf32>
    %cst_65 = arith.constant dense<0.000000e+00> : vector<8x64xf32>
    %163 = tpu.matmul %160, %162, %cst_65 {dimension_numbers = #tpu.dot_dimension_numbers<[1], [0], [0], [1], [0, 0, 1, 1], [], []>} : vector<8x192xf32>, vector<192x64xf32>, vector<8x64xf32> -> vector<8x64xf32>
    %164 = arith.addf %134, %163 : vector<8x64xf32>
    %c1 = arith.constant 1 : index
    %c0_66 = arith.constant 0 : index
    %c0_67 = arith.constant 0 : index
    %165 = vector.load %arg5[%c1, %c0_66, %c0_67] : memref<2x1x64xf32, #tpu.memory_space<vmem>>, vector<1x1x64xf32>
    %166 = vector.shape_cast %165 : vector<1x1x64xf32> to vector<1x64xf32>
    %167 = arith.mulf %164, %164 : vector<8x64xf32>
    %cst_68 = arith.constant dense<0.000000e+00> : vector<8xf32>
    %168 = vector.multi_reduction <add>, %167, %cst_68 [1] : vector<8x64xf32> to vector<8xf32>
    %169 = vector.shape_cast %168 : vector<8xf32> to vector<8x1xf32>
    %cst_69 = arith.constant 6.400000e+01 : f32
    %170 = vector.broadcast %cst_69 : f32 to vector<8x1xf32>
    %171 = arith.divf %169, %170 : vector<8x1xf32>
    %cst_70 = arith.constant 9.99999974E-6 : f32
    %172 = vector.broadcast %cst_70 : f32 to vector<8x1xf32>
    %173 = arith.addf %171, %172 : vector<8x1xf32>
    %174 = math.rsqrt %173 : vector<8x1xf32>
    %175 = vector.broadcast %174 : vector<8x1xf32> to vector<8x64xf32>
    %176 = arith.mulf %164, %175 : vector<8x64xf32>
    %177 = vector.broadcast %166 : vector<1x64xf32> to vector<8x64xf32>
    %178 = arith.mulf %176, %177 : vector<8x64xf32>
    %c1_71 = arith.constant 1 : index
    %c0_72 = arith.constant 0 : index
    %c0_73 = arith.constant 0 : index
    %179 = vector.load %arg6[%c1_71, %c0_72, %c0_73] : memref<2x64x192xf32, #tpu.memory_space<vmem>>, vector<1x64x192xf32>
    %180 = vector.shape_cast %179 : vector<1x64x192xf32> to vector<64x192xf32>
    %cst_74 = arith.constant dense<0.000000e+00> : vector<8x192xf32>
    %181 = tpu.matmul %178, %180, %cst_74 {dimension_numbers = #tpu.dot_dimension_numbers<[1], [0], [0], [1], [0, 0, 1, 1], [], []>} : vector<8x64xf32>, vector<64x192xf32>, vector<8x192xf32> -> vector<8x192xf32>
    %c1_75 = arith.constant 1 : index
    %c0_76 = arith.constant 0 : index
    %c0_77 = arith.constant 0 : index
    %182 = vector.load %arg7[%c1_75, %c0_76, %c0_77] : memref<2x64x128xf32, #tpu.memory_space<vmem>>, vector<1x64x128xf32>
    %183 = vector.shape_cast %182 : vector<1x64x128xf32> to vector<64x128xf32>
    %cst_78 = arith.constant dense<0.000000e+00> : vector<8x128xf32>
    %184 = tpu.matmul %178, %183, %cst_78 {dimension_numbers = #tpu.dot_dimension_numbers<[1], [0], [0], [1], [0, 0, 1, 1], [], []>} : vector<8x64xf32>, vector<64x128xf32>, vector<8x128xf32> -> vector<8x128xf32>
    %185 = vector.extract_strided_slice %181 {offsets = [0, 0], sizes = [8, 64], strides = [1, 1]} : vector<8x192xf32> to vector<8x64xf32>
    %186 = arith.mulf %185, %8 : vector<8x64xf32>
    %187 = vector.extract_strided_slice %184 {offsets = [0, 0], sizes = [8, 64], strides = [1, 1]} : vector<8x128xf32> to vector<8x64xf32>
    %188 = arith.mulf %187, %9 : vector<8x64xf32>
    %189 = arith.addf %186, %188 : vector<8x64xf32>
    %190 = vector.extract_strided_slice %181 {offsets = [0, 64], sizes = [8, 64], strides = [1, 1]} : vector<8x192xf32> to vector<8x64xf32>
    %191 = arith.mulf %190, %8 : vector<8x64xf32>
    %192 = vector.extract_strided_slice %184 {offsets = [0, 64], sizes = [8, 64], strides = [1, 1]} : vector<8x128xf32> to vector<8x64xf32>
    %193 = arith.mulf %192, %9 : vector<8x64xf32>
    %194 = arith.addf %191, %193 : vector<8x64xf32>
    %195 = vector.extract_strided_slice %181 {offsets = [0, 128], sizes = [8, 64], strides = [1, 1]} : vector<8x192xf32> to vector<8x64xf32>
    %c1_79 = arith.constant 1 : index
    %c0_80 = arith.constant 0 : index
    %c0_81 = arith.constant 0 : index
    %196 = vector.load %arg8[%c1_79, %c0_80, %c0_81] : memref<2x64x64xf32, #tpu.memory_space<vmem>>, vector<1x64x64xf32>
    %197 = vector.shape_cast %196 : vector<1x64x64xf32> to vector<64x64xf32>
    %cst_82 = arith.constant 0.000000e+00 : f32
    %198 = vector.broadcast %cst_82 : f32 to vector<8x64xf32>
    %199 = vector.extract_strided_slice %189 {offsets = [0, 0], sizes = [8, 16], strides = [1, 1]} : vector<8x64xf32> to vector<8x16xf32>
    %200 = vector.extract_strided_slice %194 {offsets = [0, 0], sizes = [8, 16], strides = [1, 1]} : vector<8x64xf32> to vector<8x16xf32>
    %201 = vector.extract_strided_slice %195 {offsets = [0, 0], sizes = [8, 16], strides = [1, 1]} : vector<8x64xf32> to vector<8x16xf32>
    %cst_83 = arith.constant dense<0.000000e+00> : vector<8x8xf32>
    %202 = tpu.matmul %199, %200, %cst_83 {dimension_numbers = #tpu.dot_dimension_numbers<[1], [1], [0], [0], [0, 0, 1, 0], [], []>} : vector<8x16xf32>, vector<8x16xf32>, vector<8x8xf32> -> vector<8x8xf32>
    %cst_84 = arith.constant 2.500000e-01 : f32
    %203 = vector.broadcast %cst_84 : f32 to vector<8x8xf32>
    %204 = arith.mulf %202, %203 : vector<8x8xf32>
    %205 = arith.addf %204, %15 : vector<8x8xf32>
    %cst_85 = arith.constant dense<0xFF800000> : vector<8xf32>
    %206 = vector.multi_reduction <maximumf>, %205, %cst_85 [1] : vector<8x8xf32> to vector<8xf32>
    %207 = vector.shape_cast %206 : vector<8xf32> to vector<8x1xf32>
    %208 = vector.broadcast %207 : vector<8x1xf32> to vector<8x8xf32>
    %209 = arith.subf %205, %208 : vector<8x8xf32>
    %210 = math.exp %209 : vector<8x8xf32>
    %cst_86 = arith.constant dense<0.000000e+00> : vector<8xf32>
    %211 = vector.multi_reduction <add>, %210, %cst_86 [1] : vector<8x8xf32> to vector<8xf32>
    %212 = vector.shape_cast %211 : vector<8xf32> to vector<8x1xf32>
    %213 = tpu.reciprocal %212 {approx = true} : vector<8x1xf32> -> vector<8x1xf32>
    %214 = vector.broadcast %213 : vector<8x1xf32> to vector<8x8xf32>
    %215 = arith.mulf %210, %214 : vector<8x8xf32>
    %cst_87 = arith.constant dense<0.000000e+00> : vector<8x16xf32>
    %216 = tpu.matmul %215, %201, %cst_87 {dimension_numbers = #tpu.dot_dimension_numbers<[1], [0], [0], [1], [0, 0, 1, 1], [], []>} : vector<8x8xf32>, vector<8x16xf32>, vector<8x16xf32> -> vector<8x16xf32>
    %217 = vector.extract_strided_slice %197 {offsets = [0, 0], sizes = [16, 64], strides = [1, 1]} : vector<64x64xf32> to vector<16x64xf32>
    %cst_88 = arith.constant dense<0.000000e+00> : vector<8x64xf32>
    %218 = tpu.matmul %216, %217, %cst_88 {dimension_numbers = #tpu.dot_dimension_numbers<[1], [0], [0], [1], [0, 0, 1, 1], [], []>} : vector<8x16xf32>, vector<16x64xf32>, vector<8x64xf32> -> vector<8x64xf32>
    %219 = arith.addf %198, %218 : vector<8x64xf32>
    %220 = vector.extract_strided_slice %189 {offsets = [0, 16], sizes = [8, 16], strides = [1, 1]} : vector<8x64xf32> to vector<8x16xf32>
    %221 = vector.extract_strided_slice %194 {offsets = [0, 16], sizes = [8, 16], strides = [1, 1]} : vector<8x64xf32> to vector<8x16xf32>
    %222 = vector.extract_strided_slice %195 {offsets = [0, 16], sizes = [8, 16], strides = [1, 1]} : vector<8x64xf32> to vector<8x16xf32>
    %cst_89 = arith.constant dense<0.000000e+00> : vector<8x8xf32>
    %223 = tpu.matmul %220, %221, %cst_89 {dimension_numbers = #tpu.dot_dimension_numbers<[1], [1], [0], [0], [0, 0, 1, 0], [], []>} : vector<8x16xf32>, vector<8x16xf32>, vector<8x8xf32> -> vector<8x8xf32>
    %cst_90 = arith.constant 2.500000e-01 : f32
    %224 = vector.broadcast %cst_90 : f32 to vector<8x8xf32>
    %225 = arith.mulf %223, %224 : vector<8x8xf32>
    %226 = arith.addf %225, %15 : vector<8x8xf32>
    %cst_91 = arith.constant dense<0xFF800000> : vector<8xf32>
    %227 = vector.multi_reduction <maximumf>, %226, %cst_91 [1] : vector<8x8xf32> to vector<8xf32>
    %228 = vector.shape_cast %227 : vector<8xf32> to vector<8x1xf32>
    %229 = vector.broadcast %228 : vector<8x1xf32> to vector<8x8xf32>
    %230 = arith.subf %226, %229 : vector<8x8xf32>
    %231 = math.exp %230 : vector<8x8xf32>
    %cst_92 = arith.constant dense<0.000000e+00> : vector<8xf32>
    %232 = vector.multi_reduction <add>, %231, %cst_92 [1] : vector<8x8xf32> to vector<8xf32>
    %233 = vector.shape_cast %232 : vector<8xf32> to vector<8x1xf32>
    %234 = tpu.reciprocal %233 {approx = true} : vector<8x1xf32> -> vector<8x1xf32>
    %235 = vector.broadcast %234 : vector<8x1xf32> to vector<8x8xf32>
    %236 = arith.mulf %231, %235 : vector<8x8xf32>
    %cst_93 = arith.constant dense<0.000000e+00> : vector<8x16xf32>
    %237 = tpu.matmul %236, %222, %cst_93 {dimension_numbers = #tpu.dot_dimension_numbers<[1], [0], [0], [1], [0, 0, 1, 1], [], []>} : vector<8x8xf32>, vector<8x16xf32>, vector<8x16xf32> -> vector<8x16xf32>
    %238 = vector.extract_strided_slice %197 {offsets = [16, 0], sizes = [16, 64], strides = [1, 1]} : vector<64x64xf32> to vector<16x64xf32>
    %cst_94 = arith.constant dense<0.000000e+00> : vector<8x64xf32>
    %239 = tpu.matmul %237, %238, %cst_94 {dimension_numbers = #tpu.dot_dimension_numbers<[1], [0], [0], [1], [0, 0, 1, 1], [], []>} : vector<8x16xf32>, vector<16x64xf32>, vector<8x64xf32> -> vector<8x64xf32>
    %240 = arith.addf %219, %239 : vector<8x64xf32>
    %241 = vector.extract_strided_slice %189 {offsets = [0, 32], sizes = [8, 16], strides = [1, 1]} : vector<8x64xf32> to vector<8x16xf32>
    %242 = vector.extract_strided_slice %194 {offsets = [0, 32], sizes = [8, 16], strides = [1, 1]} : vector<8x64xf32> to vector<8x16xf32>
    %243 = vector.extract_strided_slice %195 {offsets = [0, 32], sizes = [8, 16], strides = [1, 1]} : vector<8x64xf32> to vector<8x16xf32>
    %cst_95 = arith.constant dense<0.000000e+00> : vector<8x8xf32>
    %244 = tpu.matmul %241, %242, %cst_95 {dimension_numbers = #tpu.dot_dimension_numbers<[1], [1], [0], [0], [0, 0, 1, 0], [], []>} : vector<8x16xf32>, vector<8x16xf32>, vector<8x8xf32> -> vector<8x8xf32>
    %cst_96 = arith.constant 2.500000e-01 : f32
    %245 = vector.broadcast %cst_96 : f32 to vector<8x8xf32>
    %246 = arith.mulf %244, %245 : vector<8x8xf32>
    %247 = arith.addf %246, %15 : vector<8x8xf32>
    %cst_97 = arith.constant dense<0xFF800000> : vector<8xf32>
    %248 = vector.multi_reduction <maximumf>, %247, %cst_97 [1] : vector<8x8xf32> to vector<8xf32>
    %249 = vector.shape_cast %248 : vector<8xf32> to vector<8x1xf32>
    %250 = vector.broadcast %249 : vector<8x1xf32> to vector<8x8xf32>
    %251 = arith.subf %247, %250 : vector<8x8xf32>
    %252 = math.exp %251 : vector<8x8xf32>
    %cst_98 = arith.constant dense<0.000000e+00> : vector<8xf32>
    %253 = vector.multi_reduction <add>, %252, %cst_98 [1] : vector<8x8xf32> to vector<8xf32>
    %254 = vector.shape_cast %253 : vector<8xf32> to vector<8x1xf32>
    %255 = tpu.reciprocal %254 {approx = true} : vector<8x1xf32> -> vector<8x1xf32>
    %256 = vector.broadcast %255 : vector<8x1xf32> to vector<8x8xf32>
    %257 = arith.mulf %252, %256 : vector<8x8xf32>
    %cst_99 = arith.constant dense<0.000000e+00> : vector<8x16xf32>
    %258 = tpu.matmul %257, %243, %cst_99 {dimension_numbers = #tpu.dot_dimension_numbers<[1], [0], [0], [1], [0, 0, 1, 1], [], []>} : vector<8x8xf32>, vector<8x16xf32>, vector<8x16xf32> -> vector<8x16xf32>
    %259 = vector.extract_strided_slice %197 {offsets = [32, 0], sizes = [16, 64], strides = [1, 1]} : vector<64x64xf32> to vector<16x64xf32>
    %cst_100 = arith.constant dense<0.000000e+00> : vector<8x64xf32>
    %260 = tpu.matmul %258, %259, %cst_100 {dimension_numbers = #tpu.dot_dimension_numbers<[1], [0], [0], [1], [0, 0, 1, 1], [], []>} : vector<8x16xf32>, vector<16x64xf32>, vector<8x64xf32> -> vector<8x64xf32>
    %261 = arith.addf %240, %260 : vector<8x64xf32>
    %262 = vector.extract_strided_slice %189 {offsets = [0, 48], sizes = [8, 16], strides = [1, 1]} : vector<8x64xf32> to vector<8x16xf32>
    %263 = vector.extract_strided_slice %194 {offsets = [0, 48], sizes = [8, 16], strides = [1, 1]} : vector<8x64xf32> to vector<8x16xf32>
    %264 = vector.extract_strided_slice %195 {offsets = [0, 48], sizes = [8, 16], strides = [1, 1]} : vector<8x64xf32> to vector<8x16xf32>
    %cst_101 = arith.constant dense<0.000000e+00> : vector<8x8xf32>
    %265 = tpu.matmul %262, %263, %cst_101 {dimension_numbers = #tpu.dot_dimension_numbers<[1], [1], [0], [0], [0, 0, 1, 0], [], []>} : vector<8x16xf32>, vector<8x16xf32>, vector<8x8xf32> -> vector<8x8xf32>
    %cst_102 = arith.constant 2.500000e-01 : f32
    %266 = vector.broadcast %cst_102 : f32 to vector<8x8xf32>
    %267 = arith.mulf %265, %266 : vector<8x8xf32>
    %268 = arith.addf %267, %15 : vector<8x8xf32>
    %cst_103 = arith.constant dense<0xFF800000> : vector<8xf32>
    %269 = vector.multi_reduction <maximumf>, %268, %cst_103 [1] : vector<8x8xf32> to vector<8xf32>
    %270 = vector.shape_cast %269 : vector<8xf32> to vector<8x1xf32>
    %271 = vector.broadcast %270 : vector<8x1xf32> to vector<8x8xf32>
    %272 = arith.subf %268, %271 : vector<8x8xf32>
    %273 = math.exp %272 : vector<8x8xf32>
    %cst_104 = arith.constant dense<0.000000e+00> : vector<8xf32>
    %274 = vector.multi_reduction <add>, %273, %cst_104 [1] : vector<8x8xf32> to vector<8xf32>
    %275 = vector.shape_cast %274 : vector<8xf32> to vector<8x1xf32>
    %276 = tpu.reciprocal %275 {approx = true} : vector<8x1xf32> -> vector<8x1xf32>
    %277 = vector.broadcast %276 : vector<8x1xf32> to vector<8x8xf32>
    %278 = arith.mulf %273, %277 : vector<8x8xf32>
    %cst_105 = arith.constant dense<0.000000e+00> : vector<8x16xf32>
    %279 = tpu.matmul %278, %264, %cst_105 {dimension_numbers = #tpu.dot_dimension_numbers<[1], [0], [0], [1], [0, 0, 1, 1], [], []>} : vector<8x8xf32>, vector<8x16xf32>, vector<8x16xf32> -> vector<8x16xf32>
    %280 = vector.extract_strided_slice %197 {offsets = [48, 0], sizes = [16, 64], strides = [1, 1]} : vector<64x64xf32> to vector<16x64xf32>
    %cst_106 = arith.constant dense<0.000000e+00> : vector<8x64xf32>
    %281 = tpu.matmul %279, %280, %cst_106 {dimension_numbers = #tpu.dot_dimension_numbers<[1], [0], [0], [1], [0, 0, 1, 1], [], []>} : vector<8x16xf32>, vector<16x64xf32>, vector<8x64xf32> -> vector<8x64xf32>
    %282 = arith.addf %261, %281 : vector<8x64xf32>
    %283 = arith.addf %164, %282 : vector<8x64xf32>
    %c1_107 = arith.constant 1 : index
    %c0_108 = arith.constant 0 : index
    %c0_109 = arith.constant 0 : index
    %284 = vector.load %arg9[%c1_107, %c0_108, %c0_109] : memref<2x1x64xf32, #tpu.memory_space<vmem>>, vector<1x1x64xf32>
    %285 = vector.shape_cast %284 : vector<1x1x64xf32> to vector<1x64xf32>
    %286 = arith.mulf %283, %283 : vector<8x64xf32>
    %cst_110 = arith.constant dense<0.000000e+00> : vector<8xf32>
    %287 = vector.multi_reduction <add>, %286, %cst_110 [1] : vector<8x64xf32> to vector<8xf32>
    %288 = vector.shape_cast %287 : vector<8xf32> to vector<8x1xf32>
    %cst_111 = arith.constant 6.400000e+01 : f32
    %289 = vector.broadcast %cst_111 : f32 to vector<8x1xf32>
    %290 = arith.divf %288, %289 : vector<8x1xf32>
    %cst_112 = arith.constant 9.99999974E-6 : f32
    %291 = vector.broadcast %cst_112 : f32 to vector<8x1xf32>
    %292 = arith.addf %290, %291 : vector<8x1xf32>
    %293 = math.rsqrt %292 : vector<8x1xf32>
    %294 = vector.broadcast %293 : vector<8x1xf32> to vector<8x64xf32>
    %295 = arith.mulf %283, %294 : vector<8x64xf32>
    %296 = vector.broadcast %285 : vector<1x64xf32> to vector<8x64xf32>
    %297 = arith.mulf %295, %296 : vector<8x64xf32>
    %c1_113 = arith.constant 1 : index
    %c0_114 = arith.constant 0 : index
    %c0_115 = arith.constant 0 : index
    %298 = vector.load %arg10[%c1_113, %c0_114, %c0_115] : memref<2x64x384xf32, #tpu.memory_space<vmem>>, vector<1x64x384xf32>
    %299 = vector.shape_cast %298 : vector<1x64x384xf32> to vector<64x384xf32>
    %cst_116 = arith.constant dense<0.000000e+00> : vector<8x384xf32>
    %300 = tpu.matmul %297, %299, %cst_116 {dimension_numbers = #tpu.dot_dimension_numbers<[1], [0], [0], [1], [0, 0, 1, 1], [], []>} : vector<8x64xf32>, vector<64x384xf32>, vector<8x384xf32> -> vector<8x384xf32>
    %301 = vector.extract_strided_slice %300 {offsets = [0, 0], sizes = [8, 192], strides = [1, 1]} : vector<8x384xf32> to vector<8x192xf32>
    %302 = vector.extract_strided_slice %300 {offsets = [0, 192], sizes = [8, 192], strides = [1, 1]} : vector<8x384xf32> to vector<8x192xf32>
    %303 = arith.negf %301 : vector<8x192xf32>
    %304 = math.exp %303 : vector<8x192xf32>
    %cst_117 = arith.constant 1.000000e+00 : f32
    %305 = vector.broadcast %cst_117 : f32 to vector<8x192xf32>
    %306 = arith.addf %305, %304 : vector<8x192xf32>
    %307 = arith.divf %305, %306 : vector<8x192xf32>
    %308 = arith.mulf %301, %307 : vector<8x192xf32>
    %309 = arith.mulf %308, %302 : vector<8x192xf32>
    %c1_118 = arith.constant 1 : index
    %c0_119 = arith.constant 0 : index
    %c0_120 = arith.constant 0 : index
    %310 = vector.load %arg11[%c1_118, %c0_119, %c0_120] : memref<2x192x64xf32, #tpu.memory_space<vmem>>, vector<1x192x64xf32>
    %311 = vector.shape_cast %310 : vector<1x192x64xf32> to vector<192x64xf32>
    %cst_121 = arith.constant dense<0.000000e+00> : vector<8x64xf32>
    %312 = tpu.matmul %309, %311, %cst_121 {dimension_numbers = #tpu.dot_dimension_numbers<[1], [0], [0], [1], [0, 0, 1, 1], [], []>} : vector<8x192xf32>, vector<192x64xf32>, vector<8x64xf32> -> vector<8x64xf32>
    %313 = arith.addf %283, %312 : vector<8x64xf32>
    %c0_122 = arith.constant 0 : index
    %c0_123 = arith.constant 0 : index
    %314 = vector.load %arg12[%c0_122, %c0_123] : memref<1x64xf32, #tpu.memory_space<vmem>>, vector<1x64xf32>
    %315 = arith.mulf %313, %313 : vector<8x64xf32>
    %cst_124 = arith.constant dense<0.000000e+00> : vector<8xf32>
    %316 = vector.multi_reduction <add>, %315, %cst_124 [1] : vector<8x64xf32> to vector<8xf32>
    %317 = vector.shape_cast %316 : vector<8xf32> to vector<8x1xf32>
    %cst_125 = arith.constant 6.400000e+01 : f32
    %318 = vector.broadcast %cst_125 : f32 to vector<8x1xf32>
    %319 = arith.divf %317, %318 : vector<8x1xf32>
    %cst_126 = arith.constant 9.99999974E-6 : f32
    %320 = vector.broadcast %cst_126 : f32 to vector<8x1xf32>
    %321 = arith.addf %319, %320 : vector<8x1xf32>
    %322 = math.rsqrt %321 : vector<8x1xf32>
    %323 = vector.broadcast %322 : vector<8x1xf32> to vector<8x64xf32>
    %324 = arith.mulf %313, %323 : vector<8x64xf32>
    %325 = vector.broadcast %314 : vector<1x64xf32> to vector<8x64xf32>
    %326 = arith.mulf %324, %325 : vector<8x64xf32>
    %c0_127 = arith.constant 0 : index
    %c0_128 = arith.constant 0 : index
    %327 = vector.load %arg13[%c0_127, %c0_128] : memref<8x64xf32, #tpu.memory_space<vmem>>, vector<8x64xf32>
    tpu.vector_store %arg13[%c0_127, %c0_128], %326 {strides = array<i32>} : memref<8x64xf32, #tpu.memory_space<vmem>>, vector<8x64xf32>,
    return
  }
  func.func @transform_0(%arg0: i32) -> (i32, i32) {
    %c0_i32 = arith.constant 0 : i32
    %c0_i32_0 = arith.constant 0 : i32
    return %arg0, %c0_i32 : i32, i32
  }
  func.func @transform_1(%arg0: i32) -> (i32, i32) {
    %c0_i32 = arith.constant 0 : i32
    %c0_i32_0 = arith.constant 0 : i32
    %c0_i32_1 = arith.constant 0 : i32
    return %c0_i32, %c0_i32_0 : i32, i32
  }
  func.func @transform_2(%arg0: i32) -> (i32, i32) {
    %c0_i32 = arith.constant 0 : i32
    %c0_i32_0 = arith.constant 0 : i32
    %c0_i32_1 = arith.constant 0 : i32
    return %c0_i32, %c0_i32_0 : i32, i32
  }
  func.func @transform_3(%arg0: i32) -> (i32, i32) {
    %c0_i32 = arith.constant 0 : i32
    %c0_i32_0 = arith.constant 0 : i32
    %c0_i32_1 = arith.constant 0 : i32
    return %c0_i32, %c0_i32_0 : i32, i32
  }
  func.func @transform_4(%arg0: i32) -> (i32, i32, i32) {
    %c0_i32 = arith.constant 0 : i32
    %c0_i32_0 = arith.constant 0 : i32
    %c0_i32_1 = arith.constant 0 : i32
    %c0_i32_2 = arith.constant 0 : i32
    return %c0_i32, %c0_i32_0, %c0_i32_1 : i32, i32, i32
  }
  func.func @transform_5(%arg0: i32) -> (i32, i32, i32) {
    %c0_i32 = arith.constant 0 : i32
    %c0_i32_0 = arith.constant 0 : i32
    %c0_i32_1 = arith.constant 0 : i32
    %c0_i32_2 = arith.constant 0 : i32
    return %c0_i32, %c0_i32_0, %c0_i32_1 : i32, i32, i32
  }
  func.func @transform_6(%arg0: i32) -> (i32, i32, i32) {
    %c0_i32 = arith.constant 0 : i32
    %c0_i32_0 = arith.constant 0 : i32
    %c0_i32_1 = arith.constant 0 : i32
    %c0_i32_2 = arith.constant 0 : i32
    return %c0_i32, %c0_i32_0, %c0_i32_1 : i32, i32, i32
  }
  func.func @transform_7(%arg0: i32) -> (i32, i32, i32) {
    %c0_i32 = arith.constant 0 : i32
    %c0_i32_0 = arith.constant 0 : i32
    %c0_i32_1 = arith.constant 0 : i32
    %c0_i32_2 = arith.constant 0 : i32
    return %c0_i32, %c0_i32_0, %c0_i32_1 : i32, i32, i32
  }
  func.func @transform_8(%arg0: i32) -> (i32, i32, i32) {
    %c0_i32 = arith.constant 0 : i32
    %c0_i32_0 = arith.constant 0 : i32
    %c0_i32_1 = arith.constant 0 : i32
    %c0_i32_2 = arith.constant 0 : i32
    return %c0_i32, %c0_i32_0, %c0_i32_1 : i32, i32, i32
  }
  func.func @transform_9(%arg0: i32) -> (i32, i32, i32) {
    %c0_i32 = arith.constant 0 : i32
    %c0_i32_0 = arith.constant 0 : i32
    %c0_i32_1 = arith.constant 0 : i32
    %c0_i32_2 = arith.constant 0 : i32
    return %c0_i32, %c0_i32_0, %c0_i32_1 : i32, i32, i32
  }
  func.func @transform_10(%arg0: i32) -> (i32, i32, i32) {
    %c0_i32 = arith.constant 0 : i32
    %c0_i32_0 = arith.constant 0 : i32
    %c0_i32_1 = arith.constant 0 : i32
    %c0_i32_2 = arith.constant 0 : i32
    return %c0_i32, %c0_i32_0, %c0_i32_1 : i32, i32, i32
  }
  func.func @transform_11(%arg0: i32) -> (i32, i32) {
    %c0_i32 = arith.constant 0 : i32
    %c0_i32_0 = arith.constant 0 : i32
    %c0_i32_1 = arith.constant 0 : i32
    return %c0_i32, %c0_i32_0 : i32, i32
  }
  func.func @transform_12(%arg0: i32) -> (i32, i32) {
    %c0_i32 = arith.constant 0 : i32
    %c0_i32_0 = arith.constant 0 : i32
    return %arg0, %c0_i32 : i32, i32
  }
}

</mosaic_0001>

<bundles_post_ra>
// kernel: tile.15
= control target key start
LH: loop header
LB: loop body
LE: loop exit
PB: predicated region body
PF: predicated region fallthrough
CT: control target
= control target key end

     0   :  { %vm42_vm0 = vcmask 1047556   ;;  %vm44_vm1 = vcmask 130048   ;;  %s93_s22 = smov 16   ;;  %s94_s25 = smov 32   ;;  %vm54_vm2 = vcmask 523648   ;;  %vm64_vm3 = vcmask 392448   ;;  %s146_s0 = inlined_call_operand.vmem [shape: f32[8,4,16], index: 0, kind: input, shape index: {}]   ;;  %s147_s1 = inlined_call_operand.vmem [shape: f32[8,64], index: 1, kind: output, shape index: {}]  }
   0x1   :  { %v82_v0 = vld [vmem:[%s146_s0 + $0x1c] sm:$0xf]  ;;  %v83_v1 = vld [vmem:[%s146_s0 + $0x18] sm:$0xf]  ;;  %v84_v2 = vld [vmem:[%s146_s0 + $0x14] sm:$0xf] }
   0x2   :  { %8 = vst [vmem:[#allocation0 + $0x38] sm:$0xf] %v82_v0  ;;  %13 = vst [vmem:[#allocation0 + $0x30] sm:$0xf] %v83_v1  ;;  %v85_v3 = vld [vmem:[%s146_s0 + $0x10] sm:$0xf] }
   0x3   :  { %18 = vst [vmem:[#allocation0 + $0x28] sm:$0xf] %v84_v2  ;;  %v86_v4 = vld [vmem:[%s146_s0 + $0xc] sm:$0xf]  ;;  %v87_v5 = vld [vmem:[%s146_s0 + $0x8] sm:$0xf] }
   0x4   :  { %23 = vst [vmem:[#allocation0 + $0x20] sm:$0xf] %v85_v3  ;;  %28 = vst [vmem:[#allocation0 + $0x18] sm:$0xf] %v86_v4  ;;  %v88_v6 = vld [vmem:[%s146_s0 + $0x4] sm:$0xf] }
   0x5   :  { %33 = vst [vmem:[#allocation0 + $0x10] sm:$0xf] %v87_v5  ;;  %v38_v7 = vld [vmem:[%s146_s0] sm:$0xf]  ;;  %37 = vst [vmem:[#allocation0 + $0x8] sm:$0xf] %v88_v6 }
   0x6   :  { %39 = vst [vmem:[#allocation0] sm:$0xf] %v38_v7  ;;  %s92_s0 = smov 48   ;;  %vm74_vm4 = vcmask 261248  }
   0xb   :  { %v49_v8 = vld [vmem:[#allocation0 + $0x3] ss:$8 sm:$0xf0]   ;;  %v59_v9 = vld [vmem:[#allocation0 + $0x2] ss:$8 sm:$0xf0]  }
   0xc   :  { %v69_v14 = vld [vmem:[#allocation0 + $0x1] ss:$8 sm:$0xf0]   ;;  %v41_v17 = vld [vmem:[#allocation0] ss:$8 sm:$0xf0]  }
   0xd   :  { %v47_v10 = vld [vmem:[#allocation0 + $0x3] ss:$8 sm:$0xf]   ;;  %v57_v11 = vld [vmem:[#allocation0 + $0x2] ss:$8 sm:$0xf]  }
   0xe   :  { %v51_v12 = vsel %vm42_vm0, %v49_v8, %v47_v10  ;;  %v67_v13 = vld [vmem:[#allocation0 + $0x1] ss:$8 sm:$0xf]   ;;  %v40_v16 = vld [vmem:[#allocation0] ss:$8 sm:$0xf]   ;;  %v61_v18 = vsel %vm42_vm0, %v59_v9, %v57_v11 }
   0xf   :  { %52 = vrot.lane.b32.xlu0 %v51_v12, %s92_s0  ;;  %v71_v15 = vsel %vm42_vm0, %v69_v14, %v67_v13  ;;  %v43_v19 = vsel %vm42_vm0, %v41_v17, %v40_v16 }
  0x10   :  { %72 = vrot.lane.b32.xlu1 %v71_v15, %s93_s22  ;;  %45 = vst.msk [vmem:[%s147_s1] sm:$0xff] %vm44_vm1, %v43_v19  }
  0x13   :  { %62 = vrot.lane.b32.xlu0 %v61_v18, %s94_s25 }
  0x81   :  { %v53_v20 = vpop.permute.xlu0 %52  }
  0x82   :  { %55 = vst.msk [vmem:[%s147_s1] sm:$0xff] %vm54_vm2, %v53_v20   ;;  %v73_v21 = vpop.permute.xlu1 %72  }
  0x85   :  { %v63_v22 = vpop.permute.xlu0 %62  }
  0x86   :  { %65 = vst.msk [vmem:[%s147_s1] sm:$0xff] %vm64_vm3, %v63_v22  }
  0x87   :  { %75 = vst.msk [vmem:[%s147_s1] sm:$0xff] %vm74_vm4, %v73_v21  }

// kernel: causal_llama_forward.1
= control target key start
LH: loop header
LB: loop body
LE: loop exit
PB: predicated region body
PF: predicated region fallthrough
CT: control target
= control target key end

     0   :  { %17 = vsyncpa [#allocation3], 0  ;;  %s5510_s0 = inlined_call_operand.vmem [shape: s32[16,1], index: 0, kind: input, shape index: {}]   ;;  %s5511_s1 = inlined_call_operand.vmem [shape: f32[8,64], index: 1, kind: input, shape index: {}]   ;;  %s5512_s2 = inlined_call_operand.vmem [shape: f32[8,64], index: 2, kind: input, shape index: {}]   ;;  %s5513_s3 = inlined_call_operand.vmem [shape: f32[128,64], index: 3, kind: input, shape index: {}]   ;;  %s5514_s4 = inlined_call_operand.vmem [shape: f32[2,1,64], index: 4, kind: input, shape index: {}]   ;;  %s5515_s5 = inlined_call_operand.vmem [shape: f32[2,64,192], index: 5, kind: input, shape index: {}]   ;;  %s5516_s6 = inlined_call_operand.vmem [shape: f32[2,64,128], index: 6, kind: input, shape index: {}]   ;;  %s5517_s7 = inlined_call_operand.vmem [shape: f32[2,64,64], index: 7, kind: input, shape index: {}]   ;;  %s5518_s8 = inlined_call_operand.vmem [shape: f32[2,1,64], index: 8, kind: input, shape index: {}]   ;;  %s5519_s9 = inlined_call_operand.vmem [shape: f32[2,64,384], index: 9, kind: input, shape index: {}]   ;;  %s5520_s10 = inlined_call_operand.vmem [shape: f32[2,192,64], index: 10, kind: input, shape index: {}]   ;;  %s5521_s11 = inlined_call_operand.vmem [shape: f32[1,64], index: 11, kind: input, shape index: {}]   ;;  %s5522_s12 = inlined_call_operand.hbm [shape: f32[16,64], index: 12, kind: output, shape index: {}]  }
   0x1   :  { %19 = vsyncpa [#allocation3 + $0x1], 0  ;;  %s4538_s21 = smov 0   ;;  %s4540_s22 = smov 0  }
   0x2   :  { %s4542_s23 = smov 0   ;;  %s4544_s24 = smov 0  }
   0x3 LB: > { %5533 = sst [smem:[#allocation5_spill]] %s4453_s23  ;;  %s4559_s25 = sadd.s32 4294967295, %s4457_s24   ;;  %s4457_s24 = sphi %s4544_s24, %s5547_s24   ;;  %s4453_s23 = sphi %s4542_s23, %s5544_s23   ;;  %s4449_s22 = sphi %s4540_s22, %s5546_s22   ;;  %s4445_s21 = sphi %s4538_s21, %s5545_s21  }
   0x4   : > { %s3551_s26 = sadd.s32 4294967294, %s4457_s24   ;;  %s4563_s27 = sadd.s32 1, %s4457_s24  }
   0x5   : > { %s289_s28 = sadd.s32 1, %s4453_s23  ;;  %s286_s29 = ssub.s32 %s4457_s24, %s4563_s27 }
   0x6   : > { %p299_p0 = scmp.ne.s32.totalorder %s4453_s23, %s4449_s22  ;;  %p287_p1 = scmp.eq.s32.totalorder %s286_s29, 0 }
   0x7   : > { %p300_p2 = scmp.eq.s32.totalorder %s4559_s25, 1  ;;  %p305_p3 = scmp.ne.s32.totalorder %s4449_s22, %s4445_s21 }
   0x8   : > { %p306_p4 = scmp.eq.s32.totalorder %s3551_s26, 1  ;;  %p3554_p7 = scmp.ge.s32.totalorder %s4457_s24, 1 }
   0x9   : > { %s4574_s30 = scalar_select %p287_p1, %s4453_s23, %s289_s28  }
   0xa   : > { %p4576_p5 = por %p300_p2, %p299_p0  ;;  %p4580_p6 = por %p306_p4, %p305_p3 }
   0xb   : > { %5534 = sst [smem:[#allocation6_spill]] %s4574_s30  ;;  %p364_p8 = scmp.lt.s32.totalorder %s4457_s24, 3 }
   0xd   : > { %p365_p9 = pnand %p3554_p7, %p364_p8 }
   0xe   : > { %p405_p10 = scmp.lt.s32.totalorder (!%p365_p9), %s4559_s25, 1  ;;  %v418_v0 = vld [vmem:[%s5513_s3] sm:$0xff] (!%p365_p9)  ;;  %v419_v1 = vld [vmem:[%s5513_s3 + $0x8] sm:$0xff] (!%p365_p9)  ;;  %v420_v2 = vld [vmem:[%s5513_s3 + $0x10] sm:$0xff] (!%p365_p9)  ;;  %v4459_v3 = vmov (!%p365_p9), 0   ;;  %v4460_v4 = vmov (!%p365_p9), 0.0|0.0   ;;  %v409_v28 = vlaneseq (!%p365_p9) }
   0xf   : > { %368 = sbr.rel (%p365_p9) target bundleno = 8536 (0x2158), region = 68  ;;  %4336 = vset.pattern.permute.xlu0 (!%p365_p9), %v4459_v3  ;;  %4052 = vmatprep.subr.bf16.mxu1 (!%p365_p9), %v4460_v4  ;;  %v4053_v5 = vpack.c.bf16 (!%p365_p9), %v419_v1, %v418_v0  ;;  %v421_v6 = vld [vmem:[%s5513_s3 + $0x18] sm:$0xff] (!%p365_p9)  ;;  %v422_v8 = vld [vmem:[%s5513_s3 + $0x20] sm:$0xff] (!%p365_p9)  ;;  %v423_v9 = vld [vmem:[%s5513_s3 + $0x28] sm:$0xff] (!%p365_p9)  ;;  %vm4461_vm0 = vmmov (!%p365_p9), 0   ;;  %v4462_v14 = vmov (!%p365_p9), 0.0  }
  0x10   : > { %v4056_v7 = vpack.c.bf16 (!%p365_p9), %v421_v6, %v420_v2  ;;  %v4059_v11 = vpack.c.bf16 (!%p365_p9), %v423_v9, %v422_v8  ;;  %v424_v12 = vld [vmem:[%s5513_s3 + $0x30] sm:$0xff] (!%p365_p9)  ;;  %v425_v13 = vld [vmem:[%s5513_s3 + $0x38] sm:$0xff] (!%p365_p9)  ;;  %3837 = vmatprep.mubr.msk.f32.mxu1 (!%p365_p9), %vm4461_vm0, %v4462_v14  ;;  %3859 = vmatprep.subr.mxu0 (!%p365_p9), %v4462_v14  ;;  %v426_v16 = vld [vmem:[%s5513_s3 + $0x40] sm:$0xff] (!%p365_p9)  ;;  %v4653_v29 = vand.u32 (!%p365_p9), 127, %v409_v28  ;;  %v4463_v31 = vmov (!%p365_p9), 1.0   ;;  %s4464_s20 = smov (!%p365_p9), 64  }
  0x11   : > { %4054 = vmatpush3.bf16.msra.mxu1 (!%p365_p9), %v4053_v5  ;;  %3861 = vmatprep.mubr.msk.f32.mxu0 (!%p365_p9), %vm4461_vm0, %v4462_v14  ;;  %v4062_v15 = vpack.c.bf16 (!%p365_p9), %v425_v13, %v424_v12  ;;  %v427_v17 = vld [vmem:[%s5513_s3 + $0x48] sm:$0xff] (!%p365_p9)  ;;  %v428_v19 = vld [vmem:[%s5513_s3 + $0x50] sm:$0xff] (!%p365_p9)  ;;  %v429_v20 = vld [vmem:[%s5513_s3 + $0x58] sm:$0xff] (!%p365_p9)  ;;  %vm512_vm2 = vcmask (!%p365_p9), 523264   ;;  %vm721_vm3 = vcmask (!%p365_p9), 130048   ;;  %vm799_vm5 = vcmask (!%p365_p9), 64512  }
  0x12   : > { %4055 = vmatprep.subr.bf16.mxu1 (!%p365_p9), %v4460_v4  ;;  %v4065_v18 = vpack.c.bf16 (!%p365_p9), %v427_v17, %v426_v16  ;;  %v4068_v21 = vpack.c.bf16 (!%p365_p9), %v429_v20, %v428_v19  ;;  %v430_v22 = vld [vmem:[%s5513_s3 + $0x60] sm:$0xff] (!%p365_p9)  ;;  %v431_v23 = vld [vmem:[%s5513_s3 + $0x68] sm:$0xff] (!%p365_p9)  ;;  %v432_v25 = vld [vmem:[%s5513_s3 + $0x70] sm:$0xff] (!%p365_p9)  ;;  %s5530_s26 = smov (!%p365_p9), 112   ;;  %s5532_s28 = smov (!%p365_p9), 48  }
  0x13   : > { %v4071_v24 = vpack.c.bf16 (!%p365_p9), %v431_v23, %v430_v22  ;;  %v433_v26 = vld [vmem:[%s5513_s3 + $0x78] sm:$0xff] (!%p365_p9)  ;;  %v529_v36 = vld [vmem:[%s5515_s5 + $0x8] sm:$0xff] (!%p365_p9)  ;;  %v528_v39 = vld [vmem:[%s5515_s5] sm:$0xff] (!%p365_p9)  ;;  %s5529_s17 = smov (!%p365_p9), 32   ;;  %s5524_s30 = smov (!%p365_p9), 16  }
  0x14   : > { %v4074_v27 = vpack.c.bf16 (!%p365_p9), %v433_v26, %v432_v25  ;;  %v531_v37 = vld [vmem:[%s5515_s5 + $0x18] sm:$0xff] (!%p365_p9)  ;;  %v530_v40 = vld [vmem:[%s5515_s5 + $0x10] sm:$0xff] (!%p365_p9)  ;;  %v533_v42 = vld [vmem:[%s5515_s5 + $0x28] sm:$0xff] (!%p365_p9)  ;;  %s5539_s18 = smov (!%p365_p9), 32   ;;  %s5540_s19 = smov (!%p365_p9), 96  }
  0x15   : > { %4057 = vmatpush3.bf16.msra.mxu1 (!%p365_p9), %v4056_v7  ;;  %v4076_v38 = vpack.c.bf16 (!%p365_p9), %v531_v37, %v529_v36  ;;  %v4078_v41 = vpack.c.bf16 (!%p365_p9), %v530_v40, %v528_v39  ;;  %v535_v43 = vld [vmem:[%s5515_s5 + $0x38] sm:$0xff] (!%p365_p9)  ;;  %v532_v45 = vld [vmem:[%s5515_s5 + $0x20] sm:$0xff] (!%p365_p9)  ;;  %v534_v46 = vld [vmem:[%s5515_s5 + $0x30] sm:$0xff] (!%p365_p9)  ;;  %v4465_v36 = vmov (!%p365_p9), -1e+30  }
  0x16   : > { %s406_s29 = scalar_select %p405_p10, %s4559_s25, 1  ;;  %4058 = vmatprep.subr.bf16.mxu1 %v4460_v4  ;;  %v4080_v44 = vpack.c.bf16 %v535_v43, %v533_v42  ;;  %v4082_v47 = vpack.c.bf16 %v534_v46, %v532_v45  ;;  %v537_v48 = vld [vmem:[%s5515_s5 + $0x48] sm:$0xff]  ;;  %v539_v49 = vld [vmem:[%s5515_s5 + $0x58] sm:$0xff]  ;;  %v536_v51 = vld [vmem:[%s5515_s5 + $0x40] sm:$0xff] }
  0x17   : > { %v4084_v50 = vpack.c.bf16 %v539_v49, %v537_v48  ;;  %v538_v52 = vld [vmem:[%s5515_s5 + $0x50] sm:$0xff]  ;;  %v541_v54 = vld [vmem:[%s5515_s5 + $0x68] sm:$0xff]  ;;  %v543_v55 = vld [vmem:[%s5515_s5 + $0x78] sm:$0xff] }
  0x18   : > { %s3556_s15 = sshll.u32 %s406_s29, 3  ;;  %v4086_v53 = vpack.c.bf16 %v538_v52, %v536_v51  ;;  %v4088_v56 = vpack.c.bf16 %v543_v55, %v541_v54  ;;  %v540_v57 = vld [vmem:[%s5515_s5 + $0x60] sm:$0xff]  ;;  %v542_v58 = vld [vmem:[%s5515_s5 + $0x70] sm:$0xff]  ;;  %v619_v2 = vld [vmem:[%s5516_s6 + $0x8] sm:$0xff]  ;;  %s5542_s29 = smov 16  }
  0x19   : > { %s408_s23 = scalar_lea.vmem %s5510_s0, %s3556_s15  ;;  %4060 = vmatpush3.bf16.msra.mxu1 %v4059_v11  ;;  %v4090_v59 = vpack.c.bf16 %v542_v58, %v540_v57  ;;  %v4714_v60 = vld [vmem:[%s5511_s1] sm:$0xff]  ;;  %v620_v9 = vld [vmem:[%s5516_s6 + $0x10] sm:$0xff]  ;;  %v623_v13 = vld [vmem:[%s5516_s6 + $0x28] sm:$0xff]  ;;  %s5527_s15 = smov 96  }
  0x1a   : > { %v411_v10 = vld [vmem:[%s408_s23] sm:$0xff]  ;;  %4061 = vmatprep.subr.bf16.mxu1 %v4460_v4  ;;  %700 = vrot.lane.b32.xlu1 %v4714_v60, %s4464_s20  ;;  %v624_v16 = vld [vmem:[%s5516_s6 + $0x30] sm:$0xff]  ;;  %v625_v17 = vld [vmem:[%s5516_s6 + $0x38] sm:$0xff]  ;;  %s5525_s23 = smov 80  }
  0x1b   : > { %413 = vperm.xlu0 %4336, %v411_v10   ;;  %v4721_v61 = vld [vmem:[%s5512_s2] sm:$0xff]  ;;  %v621_v10 = vld [vmem:[%s5516_s6 + $0x18] sm:$0xff] }
  0x1c   : > { %v618_v1 = vld [vmem:[%s5516_s6] sm:$0xff]  ;;  %v4096_v11 = vpack.c.bf16 %v621_v10, %v620_v9  ;;  %v712_v9 = vld [vmem:[%s5517_s7 + $0x10] sm:$0xff]  ;;  %v713_v10 = vld [vmem:[%s5517_s7 + $0x18] sm:$0xff] }
  0x1d   : > { %4063 = vmatpush3.bf16.msra.mxu1 %v4062_v15  ;;  %v3559_v5 = vld [vmem:[%s5514_s4] ss:$0 sm:$0xff]  ;;  %v4093_v7 = vpack.c.bf16 %v619_v2, %v618_v1 }
  0x1e   : > { %4064 = vmatprep.subr.bf16.mxu1 %v4460_v4  ;;  %705 = vrot.lane.b32.xlu1 %v4721_v61, %s4464_s20  ;;  %v622_v12 = vld [vmem:[%s5516_s6 + $0x20] sm:$0xff] }
  0x1f   : > { %v4099_v15 = vpack.c.bf16 %v623_v13, %v622_v12  ;;  %v710_v46 = vld [vmem:[%s5517_s7] sm:$0xff]  ;;  %v4105_v12 = vpack.c.bf16 %v713_v10, %v712_v9 }
  0x21   : > { %4066 = vmatpush3.bf16.msra.mxu1 %v4065_v18  ;;  %v4102_v18 = vpack.c.bf16 %v625_v17, %v624_v16 }
  0x22   : > { %4067 = vmatprep.subr.bf16.mxu1 %v4460_v4 }
  0x25   : > { %4069 = vmatpush3.bf16.msra.mxu1 %v4068_v21 }
  0x26   : > { %4070 = vmatprep.subr.bf16.mxu1 %v4460_v4 }
  0x29   : > { %4072 = vmatpush3.bf16.msra.mxu1 %v4071_v24 }
  0x2a   : > { %4073 = vmatprep.subr.bf16.mxu1 %v4460_v4 }
  0x2d   : > { %4075 = vmatpush3.bf16.msra.mxu1 %v4074_v27 }
  0x2e   : > { %4077 = vmatprep.subr.bf16.mxu1 %v4076_v38 }
  0x8c   : > { %v4765_v21 = vpop.permute.xlu1 %700 }
  0x90   : > { %v4767_v22 = vpop.permute.xlu1 %705 }
  0x9a   : > { %v414_v30 = vpop.permute.xlu0 %413 }
  0x9b   : > { %vm415_vm1 = vcmp.eq.s32.totalorder %v4653_v29, %v414_v30 }
  0x9c   : > { %3838 = vmatmul.mubr.msk.f32.vlgmr.msra.gmra.mrb[0].mxu1 %vm415_vm1, %v4463_v31 }
  0x9d   : > { %611 = vmatprep.mubr.f32.mxu1 %v4462_v14  ;;  %4079 = vmatpush1.bf16.msra.mxu1 %v4078_v41 }
  0x9e   : > { %4081 = vmatprep.subr.bf16.mxu1 %v4080_v44 }
  0xa1   : > { %4083 = vmatpush1.bf16.msra.mxu1 %v4082_v47  ;;  %v711_v47 = vld [vmem:[%s5517_s7 + $0x8] sm:$0xff] }
  0xa2   : > { %4085 = vmatprep.subr.bf16.mxu1 %v4084_v50  ;;  %v4108_v48 = vpack.c.bf16 %v711_v47, %v710_v46 }
  0xa5   : > { %4087 = vmatpush1.bf16.msra.mxu1 %v4086_v53 }
  0xa6   : > { %4089 = vmatprep.subr.bf16.mxu1 %v4088_v56 }
  0xa9   : > { %4091 = vmatpush1.bf16.msra.mxu1 %v4090_v59 }
  0xaa   : > { %4092 = vmatprep.subr.bf16.mxu1 %v4460_v4 }
 0x16f   : > { %v4657_v32 = vpop.f32.mrb[0].mxu1 }
 0x170   : > { %v3839_v33 = vpop.f32.mrb[1].mxu1  ;;  %v511_v34 = vmul.f32 %v4657_v32, %v4657_v32 }
 0x172   : > { %v513_v35 = vsel %vm512_vm2, %v511_v34, 0.0 }
 0x173   : > { %514 = vadd.xlane.f32.xlu0 %v513_v35  ;;  %v507_v35 = vshrl.u32 %v409_v28, 7 }
 0x175   : > { %vm508_vm4 = vcmp.le.s32.totalorder %v4653_v29, %v507_v35 }
 0x176   : > { %v4789_v37 = vsel %vm508_vm4, 0.0, %v4465_v36 }
 0x200   : > { %v515_v62 = vpop.xlane.xlu0 %514 }
 0x201   : > { %v517_v63 = vmul.f32 0.015625, %v515_v62 }
 0x203   : > { %v518_v0 = vadd.f32 1e-05, %v517_v63 }
 0x205   : > { %4337 = vrsqrt.f32 %v518_v0 }
 0x20f   : > { %v4338_v3 = vpop.eup %4337 }
 0x210   : > { %v520_v6 = vmul.f32 %v4338_v3, %v4657_v32 }
 0x212   : > { %v527_v8 = vmul.f32 %v3559_v5, %v520_v6 }
 0x214   : > { %3560 = vmatmul.mubr.msk.f32.vlgmr.msra.gmra.mrb[2].mxu1 %vm512_vm2, %v527_v8 }
 0x215   : > { %4094 = vmatpush3.bf16.msra.mxu1 %v4093_v7  ;;  %3856 = vmatprep.mubr.msk.f32.mxu1 %vm4461_vm0, %v4462_v14 }
 0x216   : > { %4095 = vmatprep.subr.bf16.mxu1 %v4460_v4 }
 0x219   : > { %4097 = vmatpush3.bf16.msra.mxu1 %v4096_v11 }
 0x21a   : > { %4098 = vmatprep.subr.bf16.mxu1 %v4460_v4 }
 0x21d   : > { %4100 = vmatpush3.bf16.msra.mxu1 %v4099_v15 }
 0x21e   : > { %4101 = vmatprep.subr.bf16.mxu1 %v4460_v4 }
 0x221   : > { %4103 = vmatpush3.bf16.msra.mxu1 %v4102_v18 }
 0x222   : > { %4107 = vmatprep.subr.bf16.mxu1 %v4460_v4 }
 0x224   : > { %3857 = vmatmul.mubr.msk.f32.vlgmr.msra.gmra.mrb[4].mxu1 %vm512_vm2, %v527_v8 }
 0x225   : > { %3890 = vmatprep.mubr.msk.f32.mxu1 %vm4461_vm0, %v4462_v14  ;;  %4109 = vmatpush3.bf16.msra.mxu1 %v4108_v48 }
 0x226   : > { %3898 = vmatprep.subr.mxu1 %v4462_v14 }
 0x2e7   : > { %v613_v19 = vpop.f32.mrb[2].mxu1 }
 0x2e8   : > { %v4763_v20 = vpop.f32.mrb[3].mxu1  ;;  %v696_v24 = vmul.f32 %v613_v19, %v4714_v60  ;;  %v703_v25 = vmul.f32 %v4765_v21, %v613_v19 }
 0x2f7   : > { %v692_v23 = vpop.f32.mrb[4].mxu1 }
 0x2f8   : > { %v697_v26 = vmul.f32 %v692_v23, %v4721_v61  ;;  %v708_v27 = vmul.f32 %v4767_v22, %v692_v23  ;;  %v3858_v30 = vpop.f32.mrb[5].mxu1 }
 0x2fa   : > { %v4773_v31 = vadd.f32 %v697_v26, %v696_v24  ;;  %v4775_v33 = vadd.f32 %v708_v27, %v703_v25 }
 0x2fc   : > { %719 = vrot.lane.b32.xlu1 %v4775_v33, %s4464_s20 }
 0x36e   : > { %v720_v34 = vpop.permute.xlu1 %719 }
 0x36f   : > { %3860 = vmatpush3.xpose.msk.msra.mxu0 %vm721_vm3, %v720_v34 }
 0x370   : > { %3864 = vmatprep.subr.mxu0 %v4462_v14 }
 0x372   : > { %3862 = vmatmul.mubr.msk.f32.vlgmr.msra.gmra.mrb[0].mxu0 %vm721_vm3, %v4773_v31 }
 0x373   : > { %3865 = vmatpush3.msra.mxu0 %v4763_v20  ;;  %3866 = vmatprep.mubr.msk.f32.mxu0 %vm4461_vm0, %v4462_v14 }
 0x374   : > { %3869 = vmatprep.subr.mxu0 %v4462_v14 }
 0x445   : > { %v793_v38 = vpop.f32.mrb[0].mxu0 }
 0x446   : > { %v797_v39 = vmul.f32 0.25, %v793_v38  ;;  %v3863_v40 = vpop.f32.mrb[1].mxu0 }
 0x448   : > { %v798_v41 = vadd.f32 %v797_v39, %v4789_v37 }
 0x44a   : > { %v800_v42 = vsel %vm799_vm5, %v798_v41, -inf }
 0x44b   : > { %801 = vmax.xlane.f32.xlu1 %v800_v42  ;;  %v715_v42 = vld [vmem:[%s5517_s7 + $0x28] sm:$0xff] }
 0x45c   : > { %884 = vrot.lane.b32.xlu1 %v4773_v31, %s5530_s26 }
 0x4d8   : > { %v802_v43 = vpop.xlane.xlu1 %801 }
 0x4d9   : > { %v803_v28 = vsub.f32 %v798_v41, %v802_v43 }
 0x4db   : > { %v804_v44 = vmul.f32 1.442695, %v803_v28 }
 0x4dc   : > { %v885_v53 = vpop.permute.xlu1 %884 }
 0x4dd   : > { %4339 = vpow2.f32 %v804_v44 }
 0x4e7   : > { %v4340_v29 = vpop.eup %4339 }
 0x4e8   : > { %v806_v45 = vsel %vm799_vm5, %v4340_v29, 0.0 }
 0x4e9   : > { %807 = vadd.xlane.f32.xlu0 %v806_v45 }
 0x4ff   : > { %886 = vrot.lane.b32.xlu0 %v4775_v33, %s5532_s28 }
 0x576   : > { %v808_v49 = vpop.xlane.xlu0 %807 }
 0x577   : > { %4341 = vrcp.f32 %v808_v49 }
 0x57a   : > { %v887_v52 = vpop.permute.xlu0 %886 }
 0x581   : > { %v4342_v50 = vpop.eup %4341 }
 0x582   : > { %v810_v51 = vmul.f32 %v4342_v50, %v4340_v29 }
 0x584   : > { %3867 = vmatmul.mubr.msk.f32.vlgmr.msra.gmra.mrb[2].mxu0 %vm799_vm5, %v810_v51 }
 0x585   : > { %3870 = vmatpush3.xpose.msk.msra.mxu0 %vm721_vm3, %v887_v52  ;;  %3871 = vmatprep.mubr.msk.f32.mxu0 %vm4461_vm0, %v4462_v14 }
 0x586   : > { %3874 = vmatprep.subr.mxu0 %v4462_v14 }
 0x588   : > { %3872 = vmatmul.mubr.msk.f32.vlgmr.msra.gmra.mrb[4].mxu0 %vm721_vm3, %v885_v53 }
 0x589   : > { %3876 = vmatprep.mubr.msk.f32.mxu0 %vm4461_vm0, %v4462_v14 }
 0x657   : > { %v880_v54 = vpop.f32.mrb[2].mxu0 }
 0x658   : > { %v3868_v55 = vpop.f32.mrb[3].mxu0  ;;  %3891 = vmatmul.mubr.msk.f32.vlgmr.msra.gmra.mrb[6].mxu1 %vm721_vm3, %v880_v54 }
 0x659   : > { %3900 = vmatprep.mubr.msk.f32.mxu1 %vm4461_vm0, %v4462_v14 }
 0x65b   : > { %v958_v56 = vpop.f32.mrb[4].mxu0 }
 0x65c   : > { %v962_v57 = vmul.f32 0.25, %v958_v56  ;;  %v3873_v58 = vpop.f32.mrb[5].mxu0 }
 0x65d   : > { %v716_v58 = vld [vmem:[%s5517_s7 + $0x30] sm:$0xff] }
 0x65e   : > { %v963_v59 = vadd.f32 %v962_v57, %v4789_v37 }
 0x660   : > { %v964_v62 = vsel %vm799_vm5, %v963_v59, -inf }
 0x661   : > { %965 = vmax.xlane.f32.xlu0 %v964_v62 }
 0x677   : > { %976 = vrot.lane.b32.xlu0 %v4763_v20, %s5530_s26 }
 0x67b   : > { %1198 = vrot.lane.b32.xlu0 %v4773_v31, %s5527_s15 }
 0x6ee   : > { %v966_v63 = vpop.xlane.xlu0 %965 }
 0x6ef   : > { %v967_v0 = vsub.f32 %v963_v59, %v966_v63  ;;  %v717_v59 = vld [vmem:[%s5517_s7 + $0x38] sm:$0xff] }
 0x6f0   : > { %v4114_v62 = vpack.c.bf16 %v717_v59, %v716_v58  ;;  %v3578_v59 = vld [vmem:[%s5518_s8] ss:$0 sm:$0xff] }
 0x6f1   : > { %v968_v1 = vmul.f32 1.442695, %v967_v0 }
 0x6f2   : > { %v977_v2 = vpop.permute.xlu0 %976 }
 0x6f3   : > { %4343 = vpow2.f32 %v968_v1  ;;  %3875 = vmatpush3.msra.mxu0 %v977_v2 }
 0x6f4   : > { %4104 = vmatprep.subr.bf16.mxu0 %v4460_v4 }
 0x6f6   : > { %v1199_v18 = vpop.permute.xlu0 %1198 }
 0x6fd   : > { %v4344_v3 = vpop.eup %4343 }
 0x6fe   : > { %v970_v5 = vsel %vm799_vm5, %v4344_v3, 0.0 }
 0x6ff   : > { %971 = vadd.xlane.f32.xlu1 %v970_v5 }
 0x710   : > { %1200 = vrot.lane.b32.xlu1 %v4775_v33, %s5529_s17  ;;  %s5538_s17 = smov 112  }
 0x72b   : > { %v1194_v6 = vpop.f32.mrb[6].mxu1 }
 0x72c   : > { %v3892_v7 = vpop.f32.mrb[7].mxu1 }
 0x78c   : > { %v972_v8 = vpop.xlane.xlu1 %971 }
 0x78d   : > { %4345 = vrcp.f32 %v972_v8 }
 0x790   : > { %v1201_v16 = vpop.permute.xlu1 %1200 }
 0x797   : > { %v4346_v11 = vpop.eup %4345 }
 0x798   : > { %v974_v13 = vmul.f32 %v4346_v11, %v4344_v3 }
 0x79a   : > { %3877 = vmatmul.mubr.msk.f32.vlgmr.msra.gmra.mrb[6].mxu0 %vm799_vm5, %v974_v13 }
 0x79b   : > { %4106 = vmatpush3.bf16.msra.mxu0 %v4105_v12  ;;  %3883 = vmatprep.mubr.msk.f32.mxu0 %vm4461_vm0, %v4462_v14 }
 0x79c   : > { %3893 = vmatprep.subr.mxu0 %v4462_v14 }
 0x86d   : > { %v1048_v15 = vpop.f32.mrb[6].mxu0 }
 0x86e   : > { %v3878_v17 = vpop.f32.mrb[7].mxu0  ;;  %3884 = vmatmul.mubr.msk.f32.vlgmr.msra.gmra.mrb[8].mxu0 %vm721_vm3, %v1048_v15  ;;  %v1698_v15 = vld [vmem:[%s5519_s9 + $0x8] sm:$0xff] }
 0x86f   : > { %3894 = vmatpush3.xpose.msk.msra.mxu0 %vm721_vm3, %v1201_v16  ;;  %3895 = vmatprep.mubr.msk.f32.mxu0 %vm4461_vm0, %v4462_v14  ;;  %v1701_v16 = vld [vmem:[%s5519_s9 + $0x20] sm:$0xff] }
 0x870   : > { %4110 = vmatprep.subr.bf16.mxu0 %v4460_v4  ;;  %v4116_v17 = vpack.c.bf16 %v1701_v16, %v1698_v15  ;;  %v1899_v15 = vld [vmem:[%s5520_s10 + $0x48] sm:$0xff] }
 0x872   : > { %3896 = vmatmul.mubr.msk.f32.vlgmr.msra.gmra.mrb[10].mxu0 %vm721_vm3, %v1199_v18  ;;  %v1700_v18 = vld [vmem:[%s5519_s9 + $0x18] sm:$0xff] }
 0x873   : > { %3907 = vmatprep.mubr.msk.f32.mxu0 %vm4461_vm0, %v4462_v14 }
 0x941   : > { %v1121_v19 = vpop.f32.mrb[8].mxu0 }
 0x942   : > { %v4844_v23 = vadd.f32 %v1194_v6, %v1121_v19  ;;  %v3885_v24 = vpop.f32.mrb[9].mxu0  ;;  %v1699_v19 = vld [vmem:[%s5519_s9 + $0x10] sm:$0xff] }
 0x943   : > { %v1702_v24 = vld [vmem:[%s5519_s9 + $0x28] sm:$0xff] }
 0x945   : > { %v1272_v25 = vpop.f32.mrb[10].mxu0 }
 0x946   : > { %v1276_v26 = vmul.f32 0.25, %v1272_v25  ;;  %v3897_v27 = vpop.f32.mrb[11].mxu0  ;;  %v4133_v25 = vpack.c.bf16 %v1702_v24, %v1699_v19  ;;  %v1902_v19 = vld [vmem:[%s5520_s10 + $0x60] sm:$0xff] }
 0x947   : > { %v1707_v27 = vld [vmem:[%s5519_s9 + $0x50] sm:$0xff] }
 0x948   : > { %v1277_v30 = vadd.f32 %v1276_v26, %v4789_v37  ;;  %v1704_v26 = vld [vmem:[%s5519_s9 + $0x38] sm:$0xff] }
 0x94a   : > { %v1278_v34 = vsel %vm799_vm5, %v1277_v30, -inf }
 0x94b   : > { %1279 = vmax.xlane.f32.xlu0 %v1278_v34  ;;  %v1703_v34 = vld [vmem:[%s5519_s9 + $0x30] sm:$0xff] }
 0x961   : > { %1289 = vrot.lane.b32.xlu0 %v4763_v20, %s5527_s15  ;;  %s5537_s15 = smov 48  }
 0x965   : > { %1439 = vrot.lane.b32.xlu0 %v4773_v31, %s5525_s23  ;;  %v714_v31 = vld [vmem:[%s5517_s7 + $0x20] sm:$0xff] }
 0x966   : > { %v4111_v43 = vpack.c.bf16 %v715_v42, %v714_v31  ;;  %v1713_v31 = vld [vmem:[%s5519_s9 + $0x80] sm:$0xff] }
 0x968   : > { %4112 = vmatpush3.bf16.msra.mxu0 %v4111_v43  ;;  %v1709_v43 = vld [vmem:[%s5519_s9 + $0x60] sm:$0xff] }
 0x969   : > { %3915 = vmatprep.subr.mxu0 %v4462_v14 }
 0x9d8   : > { %v1280_v35 = vpop.xlane.xlu0 %1279 }
 0x9d9   : > { %v1281_v36 = vsub.f32 %v1277_v30, %v1280_v35  ;;  %v4120_v30 = vpack.c.bf16 %v1707_v27, %v1704_v26  ;;  %v1706_v35 = vld [vmem:[%s5519_s9 + $0x48] sm:$0xff]  ;;  %v1905_v26 = vld [vmem:[%s5520_s10 + $0x78] sm:$0xff] }
 0x9db   : > { %v1282_v38 = vmul.f32 1.442695, %v1281_v36  ;;  %v1705_v36 = vld [vmem:[%s5519_s9 + $0x40] sm:$0xff] }
 0x9dc   : > { %v1290_v39 = vpop.permute.xlu0 %1289 }
 0x9dd   : > { %4347 = vpow2.f32 %v1282_v38  ;;  %3899 = vmatpush3.msra.mxu1 %v1290_v39  ;;  %v4122_v38 = vpack.c.bf16 %v1706_v35, %v1703_v34  ;;  %v1708_v39 = vld [vmem:[%s5519_s9 + $0x58] sm:$0xff]  ;;  %v1907_v34 = vld [vmem:[%s5520_s10 + $0x88] sm:$0xff] }
 0x9de   : > { %3910 = vmatprep.subr.mxu1 %v4462_v14 }
 0x9e7   : > { %v4348_v40 = vpop.eup %4347 }
 0x9e8   : > { %v1284_v41 = vsel %vm799_vm5, %v4348_v40, 0.0 }
 0x9e9   : > { %1285 = vadd.xlane.f32.xlu1 %v1284_v41  ;;  %v1710_v41 = vld [vmem:[%s5519_s9 + $0x68] sm:$0xff] }
 0x9ea   : > { %v4124_v42 = vpack.c.bf16 %v1713_v31, %v1710_v41  ;;  %v1911_v41 = vld [vmem:[%s5520_s10 + $0xa8] sm:$0xff] }
 0x9fa   : > { %1441 = vrot.lane.b32.xlu1 %v4775_v33, %s5524_s30  ;;  %v1440_v33 = vpop.permute.xlu0 %1439 }
 0xa76   : > { %v1286_v28 = vpop.xlane.xlu1 %1285 }
 0xa77   : > { %4349 = vrcp.f32 %v1286_v28  ;;  %v1712_v28 = vld [vmem:[%s5519_s9 + $0x78] sm:$0xff] }
 0xa7a   : > { %v1442_v45 = vpop.permute.xlu1 %1441 }
 0xa81   : > { %v4350_v44 = vpop.eup %4349 }
 0xa82   : > { %v1288_v29 = vmul.f32 %v4350_v44, %v4348_v40  ;;  %v4136_v40 = vpack.c.bf16 %v1708_v39, %v1705_v36  ;;  %v1711_v44 = vld [vmem:[%s5519_s9 + $0x70] sm:$0xff] }
 0xa83   : > { %v1908_v36 = vld [vmem:[%s5520_s10 + $0x90] sm:$0xff] }
 0xa84   : > { %3901 = vmatmul.mubr.msk.f32.vlgmr.msra.gmra.mrb[8].mxu1 %vm799_vm5, %v1288_v29  ;;  %v4126_v29 = vpack.c.bf16 %v1712_v28, %v1709_v43  ;;  %v1913_v43 = vld [vmem:[%s5520_s10 + $0xb8] sm:$0xff] }
 0xa85   : > { %3911 = vmatpush3.xpose.msk.msra.mxu1 %vm721_vm3, %v1442_v45  ;;  %3912 = vmatprep.mubr.msk.f32.mxu1 %vm4461_vm0, %v4462_v14  ;;  %v1714_v45 = vld [vmem:[%s5519_s9 + $0x88] sm:$0xff] }
 0xa86   : > { %4113 = vmatprep.subr.bf16.mxu1 %v4460_v4 }
 0xa88   : > { %3913 = vmatmul.mubr.msk.f32.vlgmr.msra.gmra.mrb[10].mxu1 %vm721_vm3, %v1440_v33  ;;  %v4139_v33 = vpack.c.bf16 %v1714_v45, %v1711_v44 }
 0xa89   : > { %3924 = vmatprep.mubr.msk.f32.mxu1 %vm4461_vm0, %v4462_v14  ;;  %4115 = vmatpush3.bf16.msra.mxu1 %v4114_v62 }
 0xa8a   : > { %4132 = vmatprep.subr.bf16.mxu1 %v4460_v4 }
 0xb57   : > { %v1361_v46 = vpop.f32.mrb[8].mxu1 }
 0xb58   : > { %v3902_v47 = vpop.f32.mrb[9].mxu1  ;;  %3908 = vmatmul.mubr.msk.f32.vlgmr.msra.gmra.mrb[12].mxu0 %vm721_vm3, %v1361_v46  ;;  %v1716_v46 = vld [vmem:[%s5519_s9 + $0x98] sm:$0xff] }
 0xb59   : > { %3917 = vmatprep.mubr.msk.f32.mxu0 %vm4461_vm0, %v4462_v14  ;;  %v1719_v47 = vld [vmem:[%s5519_s9 + $0xb0] sm:$0xff] }
 0xb5b   : > { %v1513_v48 = vpop.f32.mrb[10].mxu1 }
 0xb5c   : > { %v1517_v49 = vmul.f32 0.25, %v1513_v48  ;;  %v3914_v50 = vpop.f32.mrb[11].mxu1  ;;  %v4128_v48 = vpack.c.bf16 %v1719_v47, %v1716_v46 }
 0xb5d   : > { %v1718_v50 = vld [vmem:[%s5519_s9 + $0xa8] sm:$0xff] }
 0xb5e   : > { %v1518_v51 = vadd.f32 %v1517_v49, %v4789_v37  ;;  %v1715_v49 = vld [vmem:[%s5519_s9 + $0x90] sm:$0xff] }
 0xb60   : > { %v1519_v52 = vsel %vm799_vm5, %v1518_v51, -inf }
 0xb61   : > { %1520 = vmax.xlane.f32.xlu1 %v1519_v52  ;;  %v4130_v52 = vpack.c.bf16 %v1718_v50, %v1715_v49 }
 0xbee   : > { %v1521_v53 = vpop.xlane.xlu1 %1520 }
 0xbef   : > { %v1522_v54 = vsub.f32 %v1518_v51, %v1521_v53  ;;  %v1717_v51 = vld [vmem:[%s5519_s9 + $0xa0] sm:$0xff]  ;;  %v1720_v53 = vld [vmem:[%s5519_s9 + $0xb8] sm:$0xff] }
 0xbf1   : > { %v1523_v55 = vmul.f32 1.442695, %v1522_v54  ;;  %v4142_v54 = vpack.c.bf16 %v1720_v53, %v1717_v51 }
 0xbf3   : > { %4351 = vpow2.f32 %v1523_v55 }
 0xbfd   : > { %v4352_v56 = vpop.eup %4351 }
 0xbfe   : > { %v1525_v57 = vsel %vm799_vm5, %v4352_v56, 0.0 }
 0xbff   : > { %1526 = vadd.xlane.f32.xlu0 %v1525_v57 }
 0xc15   : > { %1530 = vrot.lane.b32.xlu0 %v4763_v20, %s5525_s23 }
 0xc2b   : > { %v1434_v63 = vpop.f32.mrb[12].mxu0 }
 0xc2c   : > { %v1438_v0 = vadd.f32 %v1434_v63, %v4844_v23  ;;  %v3909_v1 = vpop.f32.mrb[13].mxu0 }
 0xc2d   : > { %v1891_v1 = vld [vmem:[%s5520_s10 + $0x8] sm:$0xff] }
 0xc8c   : > { %v1527_v2 = vpop.xlane.xlu0 %1526 }
 0xc8d   : > { %4353 = vrcp.f32 %v1527_v2  ;;  %v1892_v2 = vld [vmem:[%s5520_s10 + $0x10] sm:$0xff] }
 0xc90   : > { %v1531_v3 = vpop.permute.xlu0 %1530 }
 0xc91   : > { %3916 = vmatpush3.msra.mxu0 %v1531_v3 }
 0xc92   : > { %4117 = vmatprep.subr.bf16.mxu0 %v4116_v17  ;;  %v1900_v17 = vld [vmem:[%s5520_s10 + $0x50] sm:$0xff] }
 0xc97   : > { %v4354_v20 = vpop.eup %4353 }
 0xc98   : > { %v1529_v5 = vmul.f32 %v4354_v20, %v4352_v56  ;;  %v1893_v20 = vld [vmem:[%s5520_s10 + $0x18] sm:$0xff] }
 0xc9a   : > { %3918 = vmatmul.mubr.msk.f32.vlgmr.msra.gmra.mrb[14].mxu0 %vm799_vm5, %v1529_v5  ;;  %v4148_v5 = vpack.c.bf16 %v1893_v20, %v1892_v2  ;;  %v3587_v20 = vld [vmem:[%s5515_s5 + $0x88] sm:$0xff] }
 0xc9b   : > { %1788 = vmatprep.mubr.f32.mxu0 %v4462_v14 }
 0xd6d   : > { %v1602_v6 = vpop.f32.mrb[14].mxu0 }
 0xd6e   : > { %v3919_v7 = vpop.f32.mrb[15].mxu0  ;;  %3925 = vmatmul.mubr.msk.f32.vlgmr.msra.gmra.mrb[12].mxu1 %vm721_vm3, %v1602_v6  ;;  %v1894_v6 = vld [vmem:[%s5520_s10 + $0x20] sm:$0xff] }
 0xd6f   : > { %3943 = vmatprep.mubr.msk.f32.mxu1 %vm4461_vm0, %v4462_v14  ;;  %4134 = vmatpush3.bf16.msra.mxu1 %v4133_v25  ;;  %v1895_v7 = vld [vmem:[%s5520_s10 + $0x28] sm:$0xff]  ;;  %v1904_v25 = vld [vmem:[%s5520_s10 + $0x70] sm:$0xff] }
 0xd70   : > { %4135 = vmatprep.subr.bf16.mxu1 %v4460_v4  ;;  %v4166_v27 = vpack.c.bf16 %v1905_v26, %v1904_v25  ;;  %v3599_v25 = vld [vmem:[%s5515_s5 + $0xe8] sm:$0xff]  ;;  %v3601_v26 = vld [vmem:[%s5515_s5 + $0xf8] sm:$0xff] }
 0xd73   : > { %4137 = vmatpush3.bf16.msra.mxu1 %v4136_v40  ;;  %v1910_v40 = vld [vmem:[%s5520_s10 + $0xa0] sm:$0xff] }
 0xd74   : > { %4138 = vmatprep.subr.bf16.mxu1 %v4460_v4  ;;  %v4175_v31 = vpack.c.bf16 %v1911_v41, %v1910_v40  ;;  %v3603_v40 = vld [vmem:[%s5516_s6 + $0x40] sm:$0xff]  ;;  %v3604_v41 = vld [vmem:[%s5516_s6 + $0x48] sm:$0xff] }
 0xd77   : > { %4140 = vmatpush3.bf16.msra.mxu1 %v4139_v33 }
 0xd78   : > { %4141 = vmatprep.subr.bf16.mxu1 %v4460_v4 }
 0xd7b   : > { %4143 = vmatpush3.bf16.msra.mxu1 %v4142_v54 }
 0xe41   : > { %v1675_v8 = vpop.f32.mrb[12].mxu1 }
 0xe42   : > { %v1679_v9 = vadd.f32 %v1675_v8, %v1438_v0  ;;  %v3926_v10 = vpop.f32.mrb[13].mxu1  ;;  %v1890_v0 = vld [vmem:[%s5520_s10] sm:$0xff]  ;;  %v4151_v8 = vpack.c.bf16 %v1895_v7, %v1894_v6  ;;  %v3588_v7 = vld [vmem:[%s5515_s5 + $0x90] sm:$0xff] }
 0xe43   : > { %v4145_v3 = vpack.c.bf16 %v1891_v1, %v1890_v0  ;;  %v1897_v10 = vld [vmem:[%s5520_s10 + $0x38] sm:$0xff] }
 0xe44   : > { %v4893_v11 = vadd.f32 %v1679_v9, %v4657_v32  ;;  %v1697_v32 = vld [vmem:[%s5519_s9] sm:$0xff]  ;;  %v1896_v9 = vld [vmem:[%s5520_s10 + $0x30] sm:$0xff] }
 0xe45   : > { %v4118_v23 = vpack.c.bf16 %v1700_v18, %v1697_v32  ;;  %v1901_v32 = vld [vmem:[%s5520_s10 + $0x58] sm:$0xff] }
 0xe46   : > { %v1682_v12 = vmul.f32 %v4893_v11, %v4893_v11  ;;  %v4160_v18 = vpack.c.bf16 %v1901_v32, %v1900_v17  ;;  %v3595_v17 = vld [vmem:[%s5515_s5 + $0xc8] sm:$0xff]  ;;  %v3597_v32 = vld [vmem:[%s5515_s5 + $0xd8] sm:$0xff] }
 0xe47   : > { %4119 = vmatpush1.bf16.msra.mxu0 %v4118_v23  ;;  %v1903_v23 = vld [vmem:[%s5520_s10 + $0x68] sm:$0xff] }
 0xe48   : > { %v1683_v13 = vsel %vm512_vm2, %v1682_v12, 0.0  ;;  %4121 = vmatprep.subr.bf16.mxu0 %v4120_v30  ;;  %v4154_v12 = vpack.c.bf16 %v1897_v10, %v1896_v9  ;;  %v4163_v24 = vpack.c.bf16 %v1903_v23, %v1902_v19  ;;  %v1906_v30 = vld [vmem:[%s5520_s10 + $0x80] sm:$0xff]  ;;  %v3591_v9 = vld [vmem:[%s5515_s5 + $0xa8] sm:$0xff]  ;;  %v3593_v10 = vld [vmem:[%s5515_s5 + $0xb8] sm:$0xff] }
 0xe49   : > { %1684 = vadd.xlane.f32.xlu1 %v1683_v13  ;;  %v1898_v13 = vld [vmem:[%s5520_s10 + $0x40] sm:$0xff]  ;;  %v4169_v35 = vpack.c.bf16 %v1907_v34, %v1906_v30  ;;  %v3596_v23 = vld [vmem:[%s5515_s5 + $0xd0] sm:$0xff] }
 0xe4a   : > { %v4157_v16 = vpack.c.bf16 %v1899_v15, %v1898_v13  ;;  %v3590_v13 = vld [vmem:[%s5515_s5 + $0xa0] sm:$0xff]  ;;  %v3592_v15 = vld [vmem:[%s5515_s5 + $0xb0] sm:$0xff] }
 0xe4b   : > { %4123 = vmatpush1.bf16.msra.mxu0 %v4122_v38  ;;  %v1909_v38 = vld [vmem:[%s5520_s10 + $0x98] sm:$0xff]  ;;  %v3594_v19 = vld [vmem:[%s5515_s5 + $0xc0] sm:$0xff]  ;;  %v3600_v34 = vld [vmem:[%s5515_s5 + $0xf0] sm:$0xff] }
 0xe4c   : > { %4125 = vmatprep.subr.bf16.mxu0 %v4124_v42  ;;  %v4172_v39 = vpack.c.bf16 %v1909_v38, %v1908_v36  ;;  %v1912_v42 = vld [vmem:[%s5520_s10 + $0xb0] sm:$0xff]  ;;  %v3598_v30 = vld [vmem:[%s5515_s5 + $0xe0] sm:$0xff] }
 0xe4d   : > { %v4178_v28 = vpack.c.bf16 %v1913_v43, %v1912_v42  ;;  %v3585_v42 = vld [vmem:[%s5514_s4 + $0x1] ss:$0 sm:$0xff] }
 0xe4f   : > { %4127 = vmatpush1.bf16.msra.mxu0 %v4126_v29 }
 0xe50   : > { %4129 = vmatprep.subr.bf16.mxu0 %v4128_v48 }
 0xe53   : > { %4131 = vmatpush1.bf16.msra.mxu0 %v4130_v52 }
 0xe54   : > { %4144 = vmatprep.subr.bf16.mxu0 %v4460_v4 }
 0xed6   : > { %v1685_v55 = vpop.xlane.xlu1 %1684 }
 0xed7   : > { %v1686_v56 = vmul.f32 0.015625, %v1685_v55 }
 0xed9   : > { %v1687_v57 = vadd.f32 1e-05, %v1686_v56 }
 0xedb   : > { %4355 = vrsqrt.f32 %v1687_v57 }
 0xee5   : > { %v4356_v58 = vpop.eup %4355 }
 0xee6   : > { %v1689_v62 = vmul.f32 %v4356_v58, %v4893_v11 }
 0xee8   : > { %v1696_v63 = vmul.f32 %v3578_v59, %v1689_v62 }
 0xeea   : > { %3579 = vmatmul.mubr.msk.f32.vlgmr.msra.gmra.mrb[16].mxu0 %vm512_vm2, %v1696_v63  ;;  %3944 = vmatmul.mubr.msk.f32.vlgmr.msra.gmra.mrb[14].mxu1 %vm512_vm2, %v1696_v63 }
 0xeeb   : > { %2089 = vmatprep.mubr.f32.mxu1 %v4462_v14  ;;  %4146 = vmatpush1.bf16.msra.mxu0 %v4145_v3 }
 0xeec   : > { %4147 = vmatprep.subr.bf16.mxu0 %v4460_v4 }
 0xeef   : > { %4149 = vmatpush1.bf16.msra.mxu0 %v4148_v5  ;;  %v3589_v5 = vld [vmem:[%s5515_s5 + $0x98] sm:$0xff] }
 0xef0   : > { %4150 = vmatprep.subr.bf16.mxu0 %v4460_v4  ;;  %v4180_v6 = vpack.c.bf16 %v3589_v5, %v3587_v20 }
 0xef2   : > { %4181 = vmatprep.subr.bf16.mxu1 %v4180_v6 }
 0xef3   : > { %4152 = vmatpush1.bf16.msra.mxu0 %v4151_v8 }
 0xef4   : > { %4153 = vmatprep.subr.bf16.mxu0 %v4460_v4 }
 0xef7   : > { %4155 = vmatpush1.bf16.msra.mxu0 %v4154_v12  ;;  %v4184_v12 = vpack.c.bf16 %v3593_v10, %v3591_v9 }
 0xef8   : > { %4156 = vmatprep.subr.bf16.mxu0 %v4460_v4 }
 0xefb   : > { %4158 = vmatpush1.bf16.msra.mxu0 %v4157_v16  ;;  %v4186_v16 = vpack.c.bf16 %v3592_v15, %v3590_v13 }
 0xefc   : > { %4159 = vmatprep.subr.bf16.mxu0 %v4460_v4 }
 0xeff   : > { %4161 = vmatpush1.bf16.msra.mxu0 %v4160_v18  ;;  %v4188_v18 = vpack.c.bf16 %v3597_v32, %v3595_v17 }
 0xf00   : > { %4162 = vmatprep.subr.bf16.mxu0 %v4460_v4 }
 0xf03   : > { %4164 = vmatpush1.bf16.msra.mxu0 %v4163_v24  ;;  %v4190_v24 = vpack.c.bf16 %v3596_v23, %v3594_v19 }
 0xf04   : > { %4165 = vmatprep.subr.bf16.mxu0 %v4460_v4 }
 0xf07   : > { %4167 = vmatpush1.bf16.msra.mxu0 %v4166_v27  ;;  %v4192_v27 = vpack.c.bf16 %v3601_v26, %v3599_v25 }
 0xf08   : > { %4168 = vmatprep.subr.bf16.mxu0 %v4460_v4 }
 0xf0b   : > { %4170 = vmatpush1.bf16.msra.mxu0 %v4169_v35  ;;  %v4194_v35 = vpack.c.bf16 %v3600_v34, %v3598_v30  ;;  %v3614_v30 = vld [vmem:[%s5517_s7 + $0x50] sm:$0xff]  ;;  %v3615_v34 = vld [vmem:[%s5517_s7 + $0x58] sm:$0xff] }
 0xf0c   : > { %4171 = vmatprep.subr.bf16.mxu0 %v4460_v4 }
 0xf0f   : > { %4173 = vmatpush1.bf16.msra.mxu0 %v4172_v39 }
 0xf10   : > { %4174 = vmatprep.subr.bf16.mxu0 %v4460_v4 }
 0xf13   : > { %4176 = vmatpush1.bf16.msra.mxu0 %v4175_v31 }
 0xf14   : > { %4177 = vmatprep.subr.bf16.mxu0 %v4460_v4 }
 0xf17   : > { %4179 = vmatpush1.bf16.msra.mxu0 %v4178_v28  ;;  %v4197_v28 = vpack.c.bf16 %v3604_v41, %v3603_v40  ;;  %v3613_v40 = vld [vmem:[%s5517_s7 + $0x48] sm:$0xff] }
 0xf18   : > { %4208 = vmatprep.subr.bf16.mxu0 %v4460_v4 }
 0xfbd   : > { %v1790_v44 = vpop.f32.mrb[16].mxu0  ;;  %v1861_v29 = vpop.f32.mrb[14].mxu1 }
 0xfbe   : > { %v1792_v45 = vpop.f32.mrb[17].mxu0  ;;  %1883 = vrot.lane.b32.xlu0 %v1861_v29, %s4464_s20  ;;  %v3945_v33 = vpop.f32.mrb[15].mxu1  ;;  %v3581_v47 = vmul.f32 -1.442695, %v1790_v44  ;;  %v3605_v29 = vld [vmem:[%s5516_s6 + $0x50] sm:$0xff] }
 0xfbf   : > { %1881 = vrot.lane.b32.xlu1 %v1792_v45, %s4464_s20  ;;  %v3582_v46 = vmul.f32 -1.442695, %v1792_v45 }
 0xfc1   : > { %4357 = vpow2.f32 %v3582_v46  ;;  %v3607_v46 = vld [vmem:[%s5516_s6 + $0x60] sm:$0xff] }
 0xfc2   : > { %4359 = vpow2.f32 %v3581_v47  ;;  %v3608_v47 = vld [vmem:[%s5516_s6 + $0x68] sm:$0xff] }
 0xfcb   : > { %v4358_v48 = vpop.eup %4357 }
 0xfcc   : > { %v4360_v49 = vpop.eup %4359  ;;  %v1872_v50 = vadd.f32 1.0, %v4358_v48  ;;  %v4203_v48 = vpack.c.bf16 %v3608_v47, %v3607_v46 }
 0xfcd   : > { %v1871_v51 = vadd.f32 1.0, %v4360_v49  ;;  %v3609_v49 = vld [vmem:[%s5516_s6 + $0x70] sm:$0xff] }
 0xfce   : > { %4361 = vrcp.f32 %v1872_v50  ;;  %v3610_v50 = vld [vmem:[%s5516_s6 + $0x78] sm:$0xff] }
 0xfcf   : > { %4363 = vrcp.f32 %v1871_v51  ;;  %v4206_v51 = vpack.c.bf16 %v3610_v50, %v3609_v49 }
 0xfd8   : > { %v4362_v52 = vpop.eup %4361 }
 0xfd9   : > { %v4364_v53 = vpop.eup %4363  ;;  %v1878_v54 = vmul.f32 %v4362_v52, %v1792_v45  ;;  %v3606_v45 = vld [vmem:[%s5516_s6 + $0x58] sm:$0xff] }
 0xfda   : > { %v1877_v56 = vmul.f32 %v4364_v53, %v1790_v44  ;;  %v4200_v33 = vpack.c.bf16 %v3606_v45, %v3605_v29 }
0x1030   : > { %v1884_v55 = vpop.permute.xlu0 %1883 }
0x1031   : > { %v1889_v57 = vmul.f32 %v1884_v55, %v1878_v54  ;;  %v1882_v58 = vpop.permute.xlu1 %1881 }
0x1032   : > { %v1885_v59 = vsel %vm512_vm2, %v1882_v58, %v1884_v55 }
0x1033   : > { %v1888_v62 = vmul.f32 %v1885_v59, %v1877_v56  ;;  %3583 = vmatprep.mubr.msk.f32.mxu0 %vm512_vm2, %v1889_v57 }
0x1035   : > { %1982 = vmatmul.mubr.f32.vlgmr.msra.gmra.mrb[18].mxu0 %v1888_v62 }
0x1036   : > { %3989 = vmatprep.mubr.msk.f32.mxu0 %vm4461_vm0, %v4462_v14 }
0x1108   : > { %v1983_v63 = vpop.f32.mrb[18].mxu0 }
0x1109   : > { %v5072_v0 = vadd.f32 %v1983_v63, %v4893_v11  ;;  %v1985_v1 = vpop.f32.mrb[19].mxu0  ;;  %v3586_v11 = vld [vmem:[%s5515_s5 + $0x80] sm:$0xff] }
0x110a   : > { %v4182_v8 = vpack.c.bf16 %v3588_v7, %v3586_v11 }
0x110b   : > { %v1990_v2 = vmul.f32 %v5072_v0, %v5072_v0 }
0x110c   : > { %4183 = vmatpush1.bf16.msra.mxu1 %v4182_v8 }
0x110d   : > { %v1991_v3 = vsel %vm512_vm2, %v1990_v2, 0.0  ;;  %4185 = vmatprep.subr.bf16.mxu1 %v4184_v12 }
0x110e   : > { %1992 = vadd.xlane.f32.xlu1 %v1991_v3 }
0x1110   : > { %4187 = vmatpush1.bf16.msra.mxu1 %v4186_v16 }
0x1111   : > { %4189 = vmatprep.subr.bf16.mxu1 %v4188_v18 }
0x1114   : > { %4191 = vmatpush1.bf16.msra.mxu1 %v4190_v24 }
0x1115   : > { %4193 = vmatprep.subr.bf16.mxu1 %v4192_v27 }
0x1118   : > { %4195 = vmatpush1.bf16.msra.mxu1 %v4194_v35  ;;  %v4209_v35 = vpack.c.bf16 %v3615_v34, %v3614_v30 }
0x1119   : > { %4196 = vmatprep.subr.bf16.mxu1 %v4460_v4 }
0x111a   : > { %4210 = vmatpush3.bf16.msra.mxu0 %v4209_v35 }
0x111b   : > { %3999 = vmatprep.subr.mxu0 %v4462_v14 }
0x119b   : > { %v1993_v36 = vpop.xlane.xlu1 %1992 }
0x119c   : > { %v1994_v38 = vmul.f32 0.015625, %v1993_v36 }
0x119e   : > { %v1995_v39 = vadd.f32 1e-05, %v1994_v38 }
0x11a0   : > { %4365 = vrsqrt.f32 %v1995_v39  ;;  %v3612_v39 = vld [vmem:[%s5517_s7 + $0x40] sm:$0xff] }
0x11aa   : > { %v4366_v31 = vpop.eup %4365 }
0x11ab   : > { %v1997_v43 = vmul.f32 %v4366_v31, %v5072_v0  ;;  %v4212_v31 = vpack.c.bf16 %v3613_v40, %v3612_v39 }
0x11ad   : > { %v2004_v44 = vmul.f32 %v3585_v42, %v1997_v43 }
0x11af   : > { %3602 = vmatmul.mubr.msk.f32.vlgmr.msra.gmra.mrb[16].mxu1 %vm512_vm2, %v2004_v44 }
0x11b0   : > { %4198 = vmatpush3.bf16.msra.mxu1 %v4197_v28  ;;  %3962 = vmatprep.mubr.msk.f32.mxu1 %vm4461_vm0, %v4462_v14 }
0x11b1   : > { %4199 = vmatprep.subr.bf16.mxu1 %v4460_v4 }
0x11b4   : > { %4201 = vmatpush3.bf16.msra.mxu1 %v4200_v33 }
0x11b5   : > { %4202 = vmatprep.subr.bf16.mxu1 %v4460_v4 }
0x11b8   : > { %4204 = vmatpush3.bf16.msra.mxu1 %v4203_v48 }
0x11b9   : > { %4205 = vmatprep.subr.bf16.mxu1 %v4460_v4 }
0x11bc   : > { %4207 = vmatpush3.bf16.msra.mxu1 %v4206_v51 }
0x11bd   : > { %3965 = vmatprep.subr.mxu1 %v4462_v14 }
0x11bf   : > { %3963 = vmatmul.mubr.msk.f32.vlgmr.msra.gmra.mrb[18].mxu1 %vm512_vm2, %v2004_v44 }
0x11c0   : > { %3967 = vmatprep.mubr.msk.f32.mxu1 %vm4461_vm0, %v4462_v14 }
0x1282   : > { %v2091_v52 = vpop.f32.mrb[16].mxu1 }
0x1283   : > { %v5164_v53 = vpop.f32.mrb[17].mxu1  ;;  %v2175_v55 = vmul.f32 %v2091_v52, %v4714_v60  ;;  %v2178_v56 = vmul.f32 %v2091_v52, %v4765_v21 }
0x1292   : > { %v2171_v54 = vpop.f32.mrb[18].mxu1 }
0x1293   : > { %v2176_v57 = vmul.f32 %v2171_v54, %v4721_v61  ;;  %v2179_v58 = vmul.f32 %v2171_v54, %v4767_v22  ;;  %v3964_v59 = vpop.f32.mrb[19].mxu1 }
0x1295   : > { %v5170_v62 = vadd.f32 %v2176_v57, %v2175_v55  ;;  %v5172_v63 = vadd.f32 %v2179_v58, %v2178_v56 }
0x1297   : > { %2191 = vrot.lane.b32.xlu0 %v5172_v63, %s4464_s20 }
0x1309   : > { %v2192_v1 = vpop.permute.xlu0 %2191 }
0x130a   : > { %3966 = vmatpush3.xpose.msk.msra.mxu1 %vm721_vm3, %v2192_v1 }
0x130b   : > { %3970 = vmatprep.subr.mxu1 %v4462_v14 }
0x130d   : > { %3968 = vmatmul.mubr.msk.f32.vlgmr.msra.gmra.mrb[20].mxu1 %vm721_vm3, %v5170_v62 }
0x130e   : > { %3971 = vmatpush3.msra.mxu1 %v5164_v53  ;;  %3972 = vmatprep.mubr.msk.f32.mxu1 %vm4461_vm0, %v4462_v14 }
0x130f   : > { %3975 = vmatprep.subr.mxu1 %v4462_v14 }
0x13e0   : > { %v2264_v60 = vpop.f32.mrb[20].mxu1 }
0x13e1   : > { %v2268_v61 = vmul.f32 0.25, %v2264_v60  ;;  %v3969_v21 = vpop.f32.mrb[21].mxu1  ;;  %v3616_v60 = vld [vmem:[%s5517_s7 + $0x60] sm:$0xff] }
0x13e3   : > { %v2269_v22 = vadd.f32 %v2268_v61, %v4789_v37 }
0x13e5   : > { %v2270_v2 = vsel %vm799_vm5, %v2269_v22, -inf }
0x13e6   : > { %2271 = vmax.xlane.f32.xlu0 %v2270_v2 }
0x13fc   : > { %2356 = vrot.lane.b32.xlu0 %v5172_v63, %s5537_s15 }
0x1473   : > { %v2272_v3 = vpop.xlane.xlu0 %2271 }
0x1474   : > { %v2273_v20 = vsub.f32 %v2269_v22, %v2272_v3 }
0x1476   : > { %v2274_v5 = vmul.f32 1.442695, %v2273_v20 }
0x1477   : > { %v2357_v10 = vpop.permute.xlu0 %2356 }
0x1478   : > { %4367 = vpow2.f32 %v2274_v5 }
0x1482   : > { %v4368_v6 = vpop.eup %4367 }
0x1483   : > { %v2276_v11 = vsel %vm799_vm5, %v4368_v6, 0.0 }
0x1484   : > { %2277 = vadd.xlane.f32.xlu1 %v2276_v11 }
0x1495   : > { %2354 = vrot.lane.b32.xlu1 %v5170_v62, %s5538_s17 }
0x1511   : > { %v2278_v7 = vpop.xlane.xlu1 %2277 }
0x1512   : > { %4369 = vrcp.f32 %v2278_v7 }
0x1515   : > { %v2355_v12 = vpop.permute.xlu1 %2354 }
0x151c   : > { %v4370_v8 = vpop.eup %4369 }
0x151d   : > { %v2280_v9 = vmul.f32 %v4370_v8, %v4368_v6 }
0x151f   : > { %3973 = vmatmul.mubr.msk.f32.vlgmr.msra.gmra.mrb[22].mxu1 %vm799_vm5, %v2280_v9 }
0x1520   : > { %3976 = vmatpush3.xpose.msk.msra.mxu1 %vm721_vm3, %v2357_v10  ;;  %3977 = vmatprep.mubr.msk.f32.mxu1 %vm4461_vm0, %v4462_v14 }
0x1521   : > { %3980 = vmatprep.subr.mxu1 %v4462_v14 }
0x1523   : > { %3978 = vmatmul.mubr.msk.f32.vlgmr.msra.gmra.mrb[24].mxu1 %vm721_vm3, %v2355_v12 }
0x1524   : > { %3982 = vmatprep.mubr.msk.f32.mxu1 %vm4461_vm0, %v4462_v14 }
0x15f2   : > { %v2350_v13 = vpop.f32.mrb[22].mxu1 }
0x15f3   : > { %v3974_v15 = vpop.f32.mrb[23].mxu1 }
0x15f6   : > { %v2428_v16 = vpop.f32.mrb[24].mxu1 }
0x15f7   : > { %v2432_v17 = vmul.f32 0.25, %v2428_v16  ;;  %v3979_v32 = vpop.f32.mrb[25].mxu1 }
0x15f9   : > { %v2433_v18 = vadd.f32 %v2432_v17, %v4789_v37  ;;  %v3618_v17 = vld [vmem:[%s5517_s7 + $0x70] sm:$0xff] }
0x15fb   : > { %v2434_v19 = vsel %vm799_vm5, %v2433_v18, -inf }
0x15fc   : > { %2435 = vmax.xlane.f32.xlu1 %v2434_v19 }
0x160d   : > { %2670 = vrot.lane.b32.xlu1 %v5172_v63, %s5539_s18  ;;  %s5541_s18 = smov 80  }
0x1611   : > { %2668 = vrot.lane.b32.xlu1 %v5170_v62, %s5540_s19 }
0x1689   : > { %v2436_v23 = vpop.xlane.xlu1 %2435 }
0x168a   : > { %v2437_v24 = vsub.f32 %v2433_v18, %v2436_v23 }
0x168c   : > { %v2438_v25 = vmul.f32 1.442695, %v2437_v24 }
0x168d   : > { %v2671_v43 = vpop.permute.xlu1 %2670 }
0x168e   : > { %4371 = vpow2.f32 %v2438_v25 }
0x1691   : > { %v2669_v29 = vpop.permute.xlu1 %2668 }
0x1698   : > { %v4372_v26 = vpop.eup %4371 }
0x1699   : > { %v2440_v27 = vsel %vm799_vm5, %v4372_v26, 0.0 }
0x169a   : > { %2441 = vadd.xlane.f32.xlu0 %v2440_v27 }
0x16b0   : > { %2446 = vrot.lane.b32.xlu0 %v5164_v53, %s5538_s17 }
0x1727   : > { %v2442_v36 = vpop.xlane.xlu0 %2441 }
0x1728   : > { %4373 = vrcp.f32 %v2442_v36 }
0x172b   : > { %v2447_v38 = vpop.permute.xlu0 %2446 }
0x172c   : > { %3981 = vmatpush3.msra.mxu1 %v2447_v38 }
0x172d   : > { %4211 = vmatprep.subr.bf16.mxu1 %v4460_v4 }
0x1732   : > { %v4374_v41 = vpop.eup %4373 }
0x1733   : > { %v2444_v42 = vmul.f32 %v4374_v41, %v4372_v26  ;;  %v3639_v41 = vld [vmem:[%s5519_s9 + $0xc8] sm:$0xff] }
0x1735   : > { %3983 = vmatmul.mubr.msk.f32.vlgmr.msra.gmra.mrb[26].mxu1 %vm799_vm5, %v2444_v42  ;;  %v3641_v42 = vld [vmem:[%s5519_s9 + $0xd8] sm:$0xff] }
0x1736   : > { %4213 = vmatpush3.bf16.msra.mxu1 %v4212_v31  ;;  %3996 = vmatprep.mubr.msk.f32.mxu1 %vm4461_vm0, %v4462_v14 }
0x1737   : > { %4004 = vmatprep.subr.mxu1 %v4462_v14 }
0x1739   : > { %3997 = vmatmul.mubr.msk.f32.vlgmr.msra.gmra.mrb[28].mxu1 %vm721_vm3, %v2350_v13 }
0x173a   : > { %4006 = vmatprep.mubr.msk.f32.mxu1 %vm4461_vm0, %v4462_v14 }
0x1808   : > { %v2518_v28 = vpop.f32.mrb[26].mxu1 }
0x1809   : > { %v3984_v44 = vpop.f32.mrb[27].mxu1  ;;  %3990 = vmatmul.mubr.msk.f32.vlgmr.msra.gmra.mrb[20].mxu0 %vm721_vm3, %v2518_v28 }
0x180a   : > { %4000 = vmatpush3.xpose.msk.msra.mxu0 %vm721_vm3, %v2671_v43  ;;  %4001 = vmatprep.mubr.msk.f32.mxu0 %vm4461_vm0, %v4462_v14  ;;  %v3640_v43 = vld [vmem:[%s5519_s9 + $0xd0] sm:$0xff]  ;;  %v3643_v44 = vld [vmem:[%s5519_s9 + $0xe8] sm:$0xff] }
0x180b   : > { %4214 = vmatprep.subr.bf16.mxu0 %v4460_v4 }
0x180c   : > { %v2664_v45 = vpop.f32.mrb[28].mxu1 }
0x180d   : > { %v3998_v33 = vpop.f32.mrb[29].mxu1  ;;  %4002 = vmatmul.mubr.msk.f32.vlgmr.msra.gmra.mrb[22].mxu0 %vm721_vm3, %v2669_v29  ;;  %v4237_v29 = vpack.c.bf16 %v3643_v44, %v3640_v43  ;;  %v3682_v43 = vld [vmem:[%s5520_s10 + $0x140] sm:$0xff] }
0x180e   : > { %4013 = vmatprep.mubr.msk.f32.mxu0 %vm4461_vm0, %v4462_v14  ;;  %v3648_v33 = vld [vmem:[%s5519_s9 + $0x110] sm:$0xff] }
0x18dc   : > { %v2591_v46 = vpop.f32.mrb[20].mxu0 }
0x18dd   : > { %v2665_v47 = vadd.f32 %v2664_v45, %v2591_v46  ;;  %v3991_v48 = vpop.f32.mrb[21].mxu0  ;;  %v3645_v45 = vld [vmem:[%s5519_s9 + $0xf8] sm:$0xff] }
0x18de   : > { %v4224_v46 = vpack.c.bf16 %v3648_v33, %v3645_v45  ;;  %v3647_v48 = vld [vmem:[%s5519_s9 + $0x108] sm:$0xff]  ;;  %v3685_v45 = vld [vmem:[%s5520_s10 + $0x158] sm:$0xff] }
0x18e0   : > { %v2742_v49 = vpop.f32.mrb[22].mxu0 }
0x18e1   : > { %v2746_v50 = vmul.f32 0.25, %v2742_v49  ;;  %v4003_v51 = vpop.f32.mrb[23].mxu0  ;;  %v3646_v49 = vld [vmem:[%s5519_s9 + $0x100] sm:$0xff] }
0x18e2   : > { %v3649_v51 = vld [vmem:[%s5519_s9 + $0x118] sm:$0xff] }
0x18e3   : > { %v2747_v52 = vadd.f32 %v2746_v50, %v4789_v37 }
0x18e5   : > { %v2748_v54 = vsel %vm799_vm5, %v2747_v52, -inf }
0x18e6   : > { %2749 = vmax.xlane.f32.xlu0 %v2748_v54  ;;  %v3651_v54 = vld [vmem:[%s5519_s9 + $0x128] sm:$0xff] }
0x18fc   : > { %2759 = vrot.lane.b32.xlu0 %v5164_v53, %s5540_s19 }
0x1900   : > { %2909 = vrot.lane.b32.xlu0 %v5170_v62, %s5541_s18  ;;  %v3617_v62 = vld [vmem:[%s5517_s7 + $0x68] sm:$0xff] }
0x1901   : > { %v4215_v61 = vpack.c.bf16 %v3617_v62, %v3616_v60  ;;  %v3655_v60 = vld [vmem:[%s5519_s9 + $0x148] sm:$0xff] }
0x1903   : > { %4216 = vmatpush3.bf16.msra.mxu0 %v4215_v61  ;;  %v3657_v61 = vld [vmem:[%s5519_s9 + $0x158] sm:$0xff] }
0x1904   : > { %4021 = vmatprep.subr.mxu0 %v4462_v14 }
0x1973   : > { %v2750_v55 = vpop.xlane.xlu0 %2749 }
0x1974   : > { %v2751_v56 = vsub.f32 %v2747_v52, %v2750_v55  ;;  %v4240_v52 = vpack.c.bf16 %v3649_v51, %v3646_v49  ;;  %v3654_v55 = vld [vmem:[%s5519_s9 + $0x140] sm:$0xff]  ;;  %v3688_v49 = vld [vmem:[%s5520_s10 + $0x170] sm:$0xff] }
0x1976   : > { %v2752_v57 = vmul.f32 1.442695, %v2751_v56  ;;  %v4228_v56 = vpack.c.bf16 %v3654_v55, %v3651_v54 }
0x1977   : > { %v2760_v58 = vpop.permute.xlu0 %2759 }
0x1978   : > { %4375 = vpow2.f32 %v2752_v57  ;;  %4005 = vmatpush3.msra.mxu1 %v2760_v58  ;;  %v3650_v57 = vld [vmem:[%s5519_s9 + $0x120] sm:$0xff]  ;;  %v3653_v58 = vld [vmem:[%s5519_s9 + $0x138] sm:$0xff] }
0x1979   : > { %4016 = vmatprep.subr.mxu1 %v4462_v14 }
0x1982   : > { %v4376_v59 = vpop.eup %4375 }
0x1983   : > { %v2754_v1 = vsel %vm799_vm5, %v4376_v59, 0.0 }
0x1984   : > { %2755 = vadd.xlane.f32.xlu1 %v2754_v1  ;;  %v4230_v1 = vpack.c.bf16 %v3653_v58, %v3650_v57 }
0x1995   : > { %2911 = vrot.lane.b32.xlu1 %v5172_v63, %s5542_s29  ;;  %v2910_v63 = vpop.permute.xlu0 %2909  ;;  %s3693_s29 = sshll.u32 %s4559_s25, 7  ;;  %s4472_s25 = smov [#allocation2]  }
0x1996   : > { %s5467_s26 = scalar_lea.hbm %s5522_s12, %s3693_s29 }
0x1a11   : > { %v2756_v21 = vpop.xlane.xlu1 %2755 }
0x1a12   : > { %4377 = vrcp.f32 %v2756_v21  ;;  %v3660_v21 = vld [vmem:[%s5519_s9 + $0x170] sm:$0xff] }
0x1a15   : > { %v2912_v3 = vpop.permute.xlu1 %2911 }
0x1a1c   : > { %v4378_v22 = vpop.eup %4377 }
0x1a1d   : > { %v2758_v2 = vmul.f32 %v4378_v22, %v4376_v59  ;;  %v3652_v59 = vld [vmem:[%s5519_s9 + $0x130] sm:$0xff]  ;;  %v4232_v22 = vpack.c.bf16 %v3660_v21, %v3657_v61 }
0x1a1e   : > { %v4243_v62 = vpack.c.bf16 %v3655_v60, %v3652_v59 }
0x1a1f   : > { %4007 = vmatmul.mubr.msk.f32.vlgmr.msra.gmra.mrb[30].mxu1 %vm799_vm5, %v2758_v2  ;;  %v3656_v2 = vld [vmem:[%s5519_s9 + $0x150] sm:$0xff] }
0x1a20   : > { %4017 = vmatpush3.xpose.msk.msra.mxu1 %vm721_vm3, %v2912_v3  ;;  %4018 = vmatprep.mubr.msk.f32.mxu1 %vm4461_vm0, %v4462_v14  ;;  %v3659_v3 = vld [vmem:[%s5519_s9 + $0x168] sm:$0xff] }
0x1a21   : > { %4217 = vmatprep.subr.bf16.mxu1 %v4460_v4 }
0x1a23   : > { %4019 = vmatmul.mubr.msk.f32.vlgmr.msra.gmra.mrb[32].mxu1 %vm721_vm3, %v2910_v63  ;;  %v3658_v63 = vld [vmem:[%s5519_s9 + $0x160] sm:$0xff] }
0x1a24   : > { %4030 = vmatprep.mubr.msk.f32.mxu1 %vm4461_vm0, %v4462_v14 }
0x1af2   : > { %v2831_v20 = vpop.f32.mrb[30].mxu1 }
0x1af3   : > { %v4008_v5 = vpop.f32.mrb[31].mxu1  ;;  %4014 = vmatmul.mubr.msk.f32.vlgmr.msra.gmra.mrb[24].mxu0 %vm721_vm3, %v2831_v20  ;;  %v4234_v20 = vpack.c.bf16 %v3659_v3, %v3656_v2 }
0x1af4   : > { %4023 = vmatprep.mubr.msk.f32.mxu0 %vm4461_vm0, %v4462_v14  ;;  %v3661_v5 = vld [vmem:[%s5519_s9 + $0x178] sm:$0xff] }
0x1af6   : > { %v2983_v6 = vpop.f32.mrb[32].mxu1 }
0x1af7   : > { %v2987_v11 = vmul.f32 0.25, %v2983_v6  ;;  %v4020_v7 = vpop.f32.mrb[33].mxu1  ;;  %v4246_v6 = vpack.c.bf16 %v3661_v5, %v3658_v63 }
0x1af9   : > { %v2988_v8 = vadd.f32 %v2987_v11, %v4789_v37  ;;  %v3619_v37 = vld [vmem:[%s5517_s7 + $0x78] sm:$0xff] }
0x1afa   : > { %v4218_v32 = vpack.c.bf16 %v3619_v37, %v3618_v17  ;;  %v3668_v17 = vld [vmem:[%s5520_s10 + $0xd0] sm:$0xff] }
0x1afb   : > { %v2989_v9 = vsel %vm799_vm5, %v2988_v8, -inf }
0x1afc   : > { %2990 = vmax.xlane.f32.xlu1 %v2989_v9  ;;  %4219 = vmatpush3.bf16.msra.mxu1 %v4218_v32  ;;  %v3669_v32 = vld [vmem:[%s5520_s10 + $0xd8] sm:$0xff] }
0x1afd   : > { %4236 = vmatprep.subr.bf16.mxu1 %v4460_v4 }
0x1b89   : > { %v2991_v10 = vpop.xlane.xlu1 %2990 }
0x1b8a   : > { %v2992_v12 = vsub.f32 %v2988_v8, %v2991_v10  ;;  %v3637_v10 = vld [vmem:[%s5518_s8 + $0x1] ss:$0 sm:$0xff] }
0x1b8c   : > { %v2993_v13 = vmul.f32 1.442695, %v2992_v12 }
0x1b8e   : > { %4379 = vpow2.f32 %v2993_v13 }
0x1b98   : > { %v4380_v15 = vpop.eup %4379 }
0x1b99   : > { %v2995_v16 = vsel %vm799_vm5, %v4380_v15, 0.0 }
0x1b9a   : > { %2996 = vadd.xlane.f32.xlu0 %v2995_v16  ;;  %v3667_v16 = vld [vmem:[%s5520_s10 + $0xc8] sm:$0xff] }
0x1bb0   : > { %3000 = vrot.lane.b32.xlu0 %v5164_v53, %s5541_s18 }
0x1bc6   : > { %v2904_v18 = vpop.f32.mrb[24].mxu0 }
0x1bc7   : > { %v2908_v19 = vadd.f32 %v2904_v18, %v2665_v47  ;;  %v4015_v23 = vpop.f32.mrb[25].mxu0  ;;  %v3644_v47 = vld [vmem:[%s5519_s9 + $0xf0] sm:$0xff]  ;;  %v4252_v18 = vpack.c.bf16 %v3669_v32, %v3668_v17 }
0x1bc8   : > { %v4226_v50 = vpack.c.bf16 %v3647_v48, %v3644_v47  ;;  %v3671_v23 = vld [vmem:[%s5520_s10 + $0xe8] sm:$0xff] }
0x1bc9   : > { %v3687_v47 = vld [vmem:[%s5520_s10 + $0x168] sm:$0xff] }
0x1c27   : > { %v2997_v24 = vpop.xlane.xlu0 %2996 }
0x1c28   : > { %4381 = vrcp.f32 %v2997_v24 }
0x1c2b   : > { %v3001_v25 = vpop.permute.xlu0 %3000 }
0x1c2c   : > { %4022 = vmatpush3.msra.mxu0 %v3001_v25  ;;  %v3672_v25 = vld [vmem:[%s5520_s10 + $0xf0] sm:$0xff] }
0x1c32   : > { %v4382_v53 = vpop.eup %4381 }
0x1c33   : > { %v2999_v26 = vmul.f32 %v4382_v53, %v4380_v15  ;;  %v3666_v15 = vld [vmem:[%s5520_s10 + $0xc0] sm:$0xff]  ;;  %v3673_v53 = vld [vmem:[%s5520_s10 + $0xf8] sm:$0xff] }
0x1c34   : > { %v4249_v37 = vpack.c.bf16 %v3667_v16, %v3666_v15  ;;  %v3691_v16 = vld [vmem:[%s5521_s11] ss:$0 sm:$0xff] }
0x1c35   : > { %4024 = vmatmul.mubr.msk.f32.vlgmr.msra.gmra.mrb[26].mxu0 %vm799_vm5, %v2999_v26  ;;  %v4258_v26 = vpack.c.bf16 %v3673_v53, %v3672_v25 }
0x1c36   : > { %3260 = vmatprep.mubr.f32.mxu0 %v4462_v14 }
0x1d08   : > { %v3072_v27 = vpop.f32.mrb[26].mxu0 }
0x1d09   : > { %v4025_v30 = vpop.f32.mrb[27].mxu0  ;;  %4031 = vmatmul.mubr.msk.f32.vlgmr.msra.gmra.mrb[34].mxu1 %vm721_vm3, %v3072_v27  ;;  %v3674_v27 = vld [vmem:[%s5520_s10 + $0x100] sm:$0xff] }
0x1d0a   : > { %4049 = vmatprep.mubr.msk.f32.mxu1 %vm4461_vm0, %v4462_v14  ;;  %v3642_v14 = vld [vmem:[%s5519_s9 + $0xe0] sm:$0xff]  ;;  %4238 = vmatpush3.bf16.msra.mxu1 %v4237_v29  ;;  %v3675_v30 = vld [vmem:[%s5520_s10 + $0x108] sm:$0xff]  ;;  %v3684_v29 = vld [vmem:[%s5520_s10 + $0x150] sm:$0xff] }
0x1d0b   : > { %v4220_v31 = vpack.c.bf16 %v3642_v14, %v3639_v41  ;;  %4239 = vmatprep.subr.bf16.mxu1 %v4460_v4  ;;  %v3679_v41 = vld [vmem:[%s5520_s10 + $0x128] sm:$0xff]  ;;  %v4276_v33 = vpack.c.bf16 %v3685_v45, %v3684_v29 }
0x1d0d   : > { %4221 = vmatprep.subr.bf16.mxu0 %v4220_v31  ;;  %v3680_v31 = vld [vmem:[%s5520_s10 + $0x130] sm:$0xff] }
0x1d0e   : > { %4241 = vmatpush3.bf16.msra.mxu1 %v4240_v52 }
0x1d0f   : > { %4242 = vmatprep.subr.bf16.mxu1 %v4460_v4 }
0x1d12   : > { %4244 = vmatpush3.bf16.msra.mxu1 %v4243_v62 }
0x1d13   : > { %4245 = vmatprep.subr.bf16.mxu1 %v4460_v4 }
0x1d16   : > { %4247 = vmatpush3.bf16.msra.mxu1 %v4246_v6 }
0x1ddc   : > { %v3145_v34 = vpop.f32.mrb[34].mxu1 }
0x1ddd   : > { %v3149_v35 = vadd.f32 %v3145_v34, %v2908_v19  ;;  %v4032_v36 = vpop.f32.mrb[35].mxu1  ;;  %v3670_v19 = vld [vmem:[%s5520_s10 + $0xe0] sm:$0xff]  ;;  %v4261_v34 = vpack.c.bf16 %v3675_v30, %v3674_v27 }
0x1dde   : > { %v4255_v24 = vpack.c.bf16 %v3671_v23, %v3670_v19  ;;  %v3677_v36 = vld [vmem:[%s5520_s10 + $0x118] sm:$0xff] }
0x1ddf   : > { %v5283_v38 = vadd.f32 %v3149_v35, %v5072_v0  ;;  %v3638_v0 = vld [vmem:[%s5519_s9 + $0xc0] sm:$0xff]  ;;  %v3676_v35 = vld [vmem:[%s5520_s10 + $0x110] sm:$0xff] }
0x1de0   : > { %v4222_v28 = vpack.c.bf16 %v3641_v42, %v3638_v0  ;;  %v3681_v0 = vld [vmem:[%s5520_s10 + $0x138] sm:$0xff] }
0x1de1   : > { %v3153_v39 = vmul.f32 %v5283_v38, %v5283_v38  ;;  %v4270_v42 = vpack.c.bf16 %v3681_v0, %v3680_v31 }
0x1de2   : > { %4223 = vmatpush1.bf16.msra.mxu0 %v4222_v28  ;;  %v3683_v28 = vld [vmem:[%s5520_s10 + $0x148] sm:$0xff] }
0x1de3   : > { %v3154_v40 = vsel %vm512_vm2, %v3153_v39, 0.0  ;;  %4225 = vmatprep.subr.bf16.mxu0 %v4224_v46  ;;  %v4264_v39 = vpack.c.bf16 %v3677_v36, %v3676_v35  ;;  %v4273_v44 = vpack.c.bf16 %v3683_v28, %v3682_v43  ;;  %v3686_v46 = vld [vmem:[%s5520_s10 + $0x160] sm:$0xff] }
0x1de4   : > { %3155 = vadd.xlane.f32.xlu1 %v3154_v40  ;;  %v3678_v40 = vld [vmem:[%s5520_s10 + $0x120] sm:$0xff]  ;;  %v4279_v48 = vpack.c.bf16 %v3687_v47, %v3686_v46 }
0x1de5   : > { %v4267_v14 = vpack.c.bf16 %v3679_v41, %v3678_v40 }
0x1de6   : > { %4227 = vmatpush1.bf16.msra.mxu0 %v4226_v50  ;;  %v3689_v50 = vld [vmem:[%s5520_s10 + $0x178] sm:$0xff] }
0x1de7   : > { %4229 = vmatprep.subr.bf16.mxu0 %v4228_v56  ;;  %v4282_v51 = vpack.c.bf16 %v3689_v50, %v3688_v49 }
0x1dea   : > { %4231 = vmatpush1.bf16.msra.mxu0 %v4230_v1 }
0x1deb   : > { %4233 = vmatprep.subr.bf16.mxu0 %v4232_v22 }
0x1dee   : > { %4235 = vmatpush1.bf16.msra.mxu0 %v4234_v20 }
0x1def   : > { %4248 = vmatprep.subr.bf16.mxu0 %v4460_v4 }
0x1e71   : > { %v3156_v11 = vpop.xlane.xlu1 %3155 }
0x1e72   : > { %v3157_v7 = vmul.f32 0.015625, %v3156_v11 }
0x1e74   : > { %v3158_v8 = vadd.f32 1e-05, %v3157_v7 }
0x1e76   : > { %4383 = vrsqrt.f32 %v3158_v8 }
0x1e80   : > { %v4384_v9 = vpop.eup %4383 }
0x1e81   : > { %v3160_v12 = vmul.f32 %v4384_v9, %v5283_v38 }
0x1e83   : > { %v3167_v13 = vmul.f32 %v3637_v10, %v3160_v12 }
0x1e85   : > { %3662 = vmatmul.mubr.msk.f32.vlgmr.msra.gmra.mrb[28].mxu0 %vm512_vm2, %v3167_v13  ;;  %4050 = vmatmul.mubr.msk.f32.vlgmr.msra.gmra.mrb[36].mxu1 %vm512_vm2, %v3167_v13 }
0x1e86   : > { %4250 = vmatpush1.bf16.msra.mxu0 %v4249_v37 }
0x1e87   : > { %4251 = vmatprep.subr.bf16.mxu0 %v4460_v4 }
0x1e8a   : > { %4253 = vmatpush1.bf16.msra.mxu0 %v4252_v18 }
0x1e8b   : > { %4254 = vmatprep.subr.bf16.mxu0 %v4460_v4 }
0x1e8e   : > { %4256 = vmatpush1.bf16.msra.mxu0 %v4255_v24 }
0x1e8f   : > { %4257 = vmatprep.subr.bf16.mxu0 %v4460_v4 }
0x1e92   : > { %4259 = vmatpush1.bf16.msra.mxu0 %v4258_v26 }
0x1e93   : > { %4260 = vmatprep.subr.bf16.mxu0 %v4460_v4 }
0x1e96   : > { %4262 = vmatpush1.bf16.msra.mxu0 %v4261_v34 }
0x1e97   : > { %4263 = vmatprep.subr.bf16.mxu0 %v4460_v4 }
0x1e9a   : > { %4265 = vmatpush1.bf16.msra.mxu0 %v4264_v39 }
0x1e9b   : > { %4266 = vmatprep.subr.bf16.mxu0 %v4460_v4 }
0x1e9e   : > { %4268 = vmatpush1.bf16.msra.mxu0 %v4267_v14 }
0x1e9f   : > { %4269 = vmatprep.subr.bf16.mxu0 %v4460_v4 }
0x1ea2   : > { %4271 = vmatpush1.bf16.msra.mxu0 %v4270_v42 }
0x1ea3   : > { %4272 = vmatprep.subr.bf16.mxu0 %v4460_v4 }
0x1ea6   : > { %4274 = vmatpush1.bf16.msra.mxu0 %v4273_v44 }
0x1ea7   : > { %4275 = vmatprep.subr.bf16.mxu0 %v4460_v4 }
0x1eaa   : > { %4277 = vmatpush1.bf16.msra.mxu0 %v4276_v33 }
0x1eab   : > { %4278 = vmatprep.subr.bf16.mxu0 %v4460_v4 }
0x1eae   : > { %4280 = vmatpush1.bf16.msra.mxu0 %v4279_v48 }
0x1eaf   : > { %4281 = vmatprep.subr.bf16.mxu0 %v4460_v4 }
0x1eb2   : > { %4283 = vmatpush1.bf16.msra.mxu0 %v4282_v51 }
0x1f58   : > { %v3262_v52 = vpop.f32.mrb[28].mxu0  ;;  %v3333_v54 = vpop.f32.mrb[36].mxu1 }
0x1f59   : > { %v3264_v55 = vpop.f32.mrb[29].mxu0  ;;  %3355 = vrot.lane.b32.xlu0 %v3333_v54, %s4464_s20  ;;  %v4051_v56 = vpop.f32.mrb[37].mxu1  ;;  %v3664_v4 = vmul.f32 -1.442695, %v3262_v52 }
0x1f5a   : > { %3353 = vrot.lane.b32.xlu1 %v3264_v55, %s4464_s20  ;;  %v3665_v57 = vmul.f32 -1.442695, %v3264_v55  ;;  %s402_s20 = sand.u32 1, %s4449_s22  }
0x1f5b   : > { %s3555_s15 = sshll.u32 %s402_s20, 3  ;;  %s3479_s28 = scalar_lea.sflag [#allocation3], %s402_s20 }
0x1f5c   : > { %4385 = vpow2.f32 %v3665_v57  ;;  %s404_s16 = scalar_lea.vmem [#allocation2], %s3555_s15  ;;  %s4399_s15 = sshll.u32 %s4472_s25, 4  ;;  %s4400_s15 = int_to_ptr.vmem [resolvable:$false] %s4399_s15 }
0x1f5d   : > { %4387 = vpow2.f32 %v3664_v4  ;;  %s3492_s19 = sshll.u32 %s404_s16, 4  ;;  %s4401_s18 = scalar_lea.vmem %s4400_s15, 256  ;;  %s5469_s19 = int_to_ptr.vmem [resolvable:$true] %s3492_s19 }
0x1f5e   : > { %s4395_s17 = scalar_lea.vmem %s5469_s19, 128  ;;  %p4402_p0 = scmp.lt.s32.totalorder %s5469_s19, %s4400_s15 }
0x1f5f   : > { %p4396_p11 = scmp.ne.s32.totalorder %s5469_s19, %s4395_s17  ;;  %p4403_p1 = scmp.lt.s32.totalorder %s4401_s18, %s4395_s17 }
0x1f61   : > { %p4397_p12 = pnand %p4396_p11, %p4576_p5  ;;  %p4404_p2 = por %p4403_p1, %p4402_p0 }
0x1f63   : > { %p4398_p13 = pneg %p4397_p12 }
0x1f65   : > { %p4405_p3 = pnand %p4404_p2, %p4398_p13 }
0x1f66   : > { %v4386_v58 = vpop.eup %4385 }
0x1f67   : > { %v4388_v59 = vpop.eup %4387  ;;  %v3344_v1 = vadd.f32 1.0, %v4386_v58 }
0x1f68   : > { %v3343_v60 = vadd.f32 1.0, %v4388_v59 }
0x1f69   : > { %4389 = vrcp.f32 %v3344_v1 }
0x1f6a   : > { %4391 = vrcp.f32 %v3343_v60 }
0x1f73   : > { %v4390_v62 = vpop.eup %4389 }
0x1f74   : > { %v4392_v61 = vpop.eup %4391  ;;  %v3350_v21 = vmul.f32 %v4390_v62, %v3264_v55 }
0x1f75   : > { %v3349_v2 = vmul.f32 %v4392_v61, %v3262_v52 }
0x1fcb   : > { %v3356_v22 = vpop.permute.xlu0 %3355 }
0x1fcc   : > { %v3361_v3 = vmul.f32 %v3356_v22, %v3350_v21  ;;  %v3354_v63 = vpop.permute.xlu1 %3353 }
0x1fcd   : > { %v3357_v20 = vsel %vm512_vm2, %v3354_v63, %v3356_v22 }
0x1fce   : > { %v3360_v5 = vmul.f32 %v3357_v20, %v3349_v2  ;;  %3690 = vmatprep.mubr.msk.f32.mxu0 %vm512_vm2, %v3361_v3 }
0x1fd0   : > { %3455 = vmatmul.mubr.f32.vlgmr.msra.gmra.mrb[30].mxu0 %v3360_v5 }
0x20a3   : > { %v3456_v6 = vpop.f32.mrb[30].mxu0 }
0x20a4   : > { %v3460_v11 = vadd.f32 %v3456_v6, %v5283_v38  ;;  %v3458_v7 = vpop.f32.mrb[31].mxu0 }
0x20a6   : > { %v3462_v8 = vmul.f32 %v3460_v11, %v3460_v11 }
0x20a8   : > { %v3463_v9 = vsel %vm512_vm2, %v3462_v8, 0.0 }
0x20a9   : > { %3464 = vadd.xlane.f32.xlu1 %v3463_v9 }
0x2136   : > { %v3465_v10 = vpop.xlane.xlu1 %3464 }
0x2137   : > { %v3466_v12 = vmul.f32 0.015625, %v3465_v10 }
0x2139   : > { %v3467_v13 = vadd.f32 1e-05, %v3466_v12 }
0x213b   : > { %4393 = vrsqrt.f32 %v3467_v13 }
0x2145   : > { %v4394_v15 = vpop.eup %4393 }
0x2146   : > { %v3469_v38 = vmul.f32 %v4394_v15, %v3460_v11 }
0x2148   : > { %v3476_v17 = vmul.f32 %v3691_v16, %v3469_v38 }
0x214a   : > { %3477 = vst.msk [vmem:[%s404_s16] sm:$0xff] %vm512_vm2, %v3476_v17 }
0x214b   : > { %4408 = shalt.err (!%p4405_p3)
}
0x214c   : > { %s4409_s20 = scalar_lea.hbm %s5467_s26, 128  ;;  %s4413_s23 = scalar_lea.hbm %s5522_s12, 256 }
0x214d   : > { %p4410_p4 = scmp.ne.s32.totalorder %s5467_s26, %s4409_s20  ;;  %p4414_p9 = scmp.lt.u32.totalorder %s5467_s26, %s5522_s12 }
0x214e   : > { %p4415_p10 = scmp.lt.u32.totalorder %s4413_s23, %s4409_s20  ;;  %p4417_p12 = scmp.lt.u32.totalorder %s4409_s20, %s5467_s26 }
0x214f   : > { %p4411_p7 = pnand %p4410_p4, %p4576_p5 }
0x2150   : > { %p4416_p11 = por %p4415_p10, %p4414_p9 }
0x2151   : > { %p4412_p8 = pneg %p4411_p7 }
0x2152   : > { %p4418_p13 = por %p4417_p12, %p4416_p11 }
0x2154   : > { %p4419_p0 = pnand %p4418_p13, %p4412_p8 }
0x2156   : > { %4422 = shalt.err (!%p4419_p0)
}
0x2157   : > { %4284 = dma.vmem_to_hbm [thread:$0]  (%p4576_p5), %s5469_s19, 128, %s5467_s26, %s3479_s28  }
0x2158 PF: > { %p4290_p1 = scmp.ge.s32.totalorder %s4457_s24, 2  ;;  %s3504_s17 = sand.u32 1, %s4445_s21  }
0x2159   : > { %s3505_s15 = scalar_lea.sflag [#allocation3], %s3504_s17 }
0x215a   : > { %p4287_p2 = pnand %p4290_p1, %p4580_p6 }
0x215c   : > { %4440 = dma.done.wait (!%p4287_p2), %s3505_s15, 128  }
0x215d   : > { %4442 = vsyncadd (!%p4287_p2), %s3505_s15, 4294967168  ;;  %s5543_s18 = sld [smem:[#allocation5_spill]]  ;;  %s5544_s23 = sld [smem:[#allocation6_spill]] }
0x215e   : > { %p22_p3 = scmp.ge.s32.totalorder %s4563_s27, 4   ;;  %s5545_s21 = smov %s4449_s22 }
0x215f   : > { %s5547_s24 = smov %s4563_s27 }
0x2160   :  { %24 = sbr.rel (!%p22_p3) target bundleno = 3 (0x3), region = 110 }
0x2163   : > { %s5546_s22 = smov %s5543_s18 }
0x2167   :  { %3510 = vsyncpa [#allocation3], 1 }
0x2168   :  { %3512 = vsyncpa [#allocation3 + $0x1], 1 }

</bundles_post_ra>
